<compile_context>
chip_gen: v7x
topology: tpu7x:2x2x1
jax: 0.10.0
libtpu: 0.0.40
codegen_flags: <defaults>
</compile_context>

<pallas_src>
import jax
import jax.numpy as jnp
from jax.experimental import pallas as pl
from jax.experimental.pallas import tpu as pltpu

NUM_LAYERS = 4
LEAKY_SLOPE = 0.2   # GATConv default negative_slope
BN_EPS = 1e-5
NEG_BIG = -1e30

_SMEM = pl.BlockSpec(memory_space=pltpu.MemorySpace.SMEM)
_VMEM = pl.BlockSpec(memory_space=pltpu.MemorySpace.VMEM)


def _leaky_relu(a):
    return jnp.where(a > 0, a, LEAKY_SLOPE * a)


# ----------------------------------------------------------------------------
# Fused per-layer kernel: EdgeMLP + self-loop mean fill + GATConv + BN/ReLU
# ----------------------------------------------------------------------------
def fused_layer_kernel(src_ref, dst_ref,                      # SMEM (E,) int32
                       x_ref, e_ref,                          # VMEM (N,F), (E,Ein)
                       w1s_ref, w1d_ref, w1e_ref, b1_ref, w2_ref, b2_ref,   # edge MLP
                       wt_ref, asrc_ref, adst_ref, aew_ref, gbias_ref,      # GAT
                       gamma_ref, beta_ref,                                 # BatchNorm
                       e_out_ref, x_out_ref,                  # outputs (E,D), (N,D)
                       xs1_sc, xd1_sc, xlin_sc, g_sc,
                       ae_sc, asrc_sc, adst_sc, alpha_sc,
                       sumae_sc, cnt_sc, m_sc, denom_sc, acc_sc):
    E = e_ref.shape[0]
    x = x_ref[...]

    # ---------------- EdgeConvLayer (MetaLayer edge model) ----------------
    # First linear applied per NODE (N rows), gathered per edge afterwards:
    #   (x W1s)[src] + (x W1d)[dst]  ==  cat[x[src], x[dst]] W1[:2F]
    xs1_sc[...] = jnp.dot(x, w1s_ref[...], preferred_element_type=jnp.float32)
    xd1_sc[...] = jnp.dot(x, w1d_ref[...], preferred_element_type=jnp.float32)
    e1 = jnp.dot(e_ref[...], w1e_ref[...],
                 preferred_element_type=jnp.float32) + b1_ref[...]

    def gather_body(i, carry):                 # index-driven gather (no one-hot)
        s = src_ref[i]
        d = dst_ref[i]
        g_sc[i] = xs1_sc[s] + xd1_sc[d]
        return carry
    jax.lax.fori_loop(0, E, gather_body, 0)

    h_e = jnp.maximum(g_sc[...] + e1, 0.0)
    e_new = jnp.dot(h_e, w2_ref[...],
                    preferred_element_type=jnp.float32) + b2_ref[...]
    e_out_ref[...] = e_new

    # ---------------- GATConv (MetaLayer node model) ----------------
    x_lin = jnp.dot(x, wt_ref[...], preferred_element_type=jnp.float32)      # (N,D)
    xlin_sc[...] = x_lin
    # attention logits via VPU lane reductions (no 1-column MXU matmuls)
    asrc_sc[...] = jnp.sum(x_lin * asrc_ref[...], axis=-1, keepdims=True)    # (N,1)
    adst_sc[...] = jnp.sum(x_lin * adst_ref[...], axis=-1, keepdims=True)    # (N,1)
    # lin_edge folded into aew (= W_e @ att_edge), so no (E,D) e_lin buffer
    ae_sc[...] = jnp.sum(e_new * aew_ref[...], axis=-1, keepdims=True)       # (E,1)

    sumae_sc[...] = jnp.zeros_like(sumae_sc)
    cnt_sc[...] = jnp.zeros_like(cnt_sc)
    m_sc[...] = jnp.full_like(m_sc, NEG_BIG)

    # pass 1 over edges: per-edge alpha, per-node running max, and the per-node
    # sums/counts needed for the self-loop edge_attr fill_value='mean'
    def alpha_body(i, carry):
        s = src_ref[i]
        d = dst_ref[i]
        ae = ae_sc[i]                                            # (1,)
        al = _leaky_relu(asrc_sc[s] + adst_sc[d] + ae)           # (1,)
        alpha_sc[i] = al
        sumae_sc[d] = sumae_sc[d] + ae
        cnt_sc[d] = cnt_sc[d] + 1.0
        m_sc[d] = jnp.maximum(m_sc[d], al)
        return carry
    jax.lax.fori_loop(0, E, alpha_body, 0)

    # self-loop (one per node; edge feature = mean of incoming edge features,
    # which for the scalar logit is just the mean of incoming logits)
    cnt = cnt_sc[...]
    ae_self = jnp.where(cnt > 0, sumae_sc[...] / jnp.maximum(cnt, 1.0), 0.0)
    alpha_self = _leaky_relu(asrc_sc[...] + adst_sc[...] + ae_self)          # (N,1)
    m = jnp.maximum(m_sc[...], alpha_self)
    m_sc[...] = m
    w_self = jnp.exp(alpha_self - m)                                         # (N,1)
    denom_sc[...] = w_self
    acc_sc[...] = w_self * x_lin                                             # (N,D)

    # pass 2 over edges: softmax numerators + weighted message scatter-add
    def agg_body(i, carry):
        s = src_ref[i]
        d = dst_ref[i]
        w = jnp.exp(alpha_sc[i] - m_sc[d])                       # (1,)
        denom_sc[d] = denom_sc[d] + w
        acc_sc[d] = acc_sc[d] + w * xlin_sc[s]
        return carry
    jax.lax.fori_loop(0, E, agg_body, 0)

    h = acc_sc[...] / denom_sc[...] + gbias_ref[...]                         # (N,D)

    # ---------------- relu(BatchNorm(h)) (training-mode batch stats) ----------
    mean = jnp.mean(h, axis=0, keepdims=True)
    var = jnp.mean((h - mean) ** 2, axis=0, keepdims=True)
    y = (h - mean) * jax.lax.rsqrt(var + BN_EPS) * gamma_ref[...] + beta_ref[...]
    x_out_ref[...] = jnp.maximum(y, 0.0)


# ----------------------------------------------------------------------------
# Fused readout kernel: global_mean_pool(edge_attr, batch[src]) + 3-layer MLP
# ----------------------------------------------------------------------------
def pool_mlp_kernel(src_ref, batch_ref,                        # SMEM (E,), (N,)
                    e_ref,                                     # VMEM (E, D)
                    w1_ref, b1_ref, w2_ref, b2_ref, w3_ref, b3_ref,
                    o_ref,                                     # (B, 1)
                    sum_sc, cnt_sc):                           # (B, D), (B, 1)
    E = e_ref.shape[0]
    sum_sc[...] = jnp.zeros_like(sum_sc)
    cnt_sc[...] = jnp.zeros_like(cnt_sc)

    def body(i, carry):                        # streamed segment-mean (no (B,E) matrix)
        b = batch_ref[src_ref[i]]              # graph id of the edge's source node
        sum_sc[b] = sum_sc[b] + e_ref[i]
        cnt_sc[b] = cnt_sc[b] + 1.0
        return carry
    jax.lax.fori_loop(0, E, body, 0)

    pooled = sum_sc[...] / jnp.maximum(cnt_sc[...], 1.0)                     # (B, D)
    h = jnp.maximum(jnp.dot(pooled, w1_ref[...],
                            preferred_element_type=jnp.float32) + b1_ref[...], 0.0)
    h = jnp.maximum(jnp.dot(h, w2_ref[...],
                            preferred_element_type=jnp.float32) + b2_ref[...], 0.0)
    o_ref[...] = jnp.dot(h, w3_ref[...],
                         preferred_element_type=jnp.float32) + b3_ref[...]


# ----------------------------------------------------------------------------
# pallas_call wrappers
# ----------------------------------------------------------------------------
def _layer_call(src, dst, x, edge_attr, em, gat, bn):
    N = x.shape[0]
    E = edge_attr.shape[0]
    D = em["b2"].shape[1]
    f32 = jnp.float32
    # Fold GAT lin_edge into the edge attention vector: a_edge = e_new @ (W_e att_edge^T)
    aew = (gat["we"] @ gat["att_edge"].T).T        # (1, D) -- tiny host/XLA glue

    out_shape = (jax.ShapeDtypeStruct((E, D), f32),   # new edge_attr
                 jax.ShapeDtypeStruct((N, D), f32))   # new x
    scratch = [
        pltpu.VMEM((N, D), f32),   # xs1 = x @ W1_src
        pltpu.VMEM((N, D), f32),   # xd1 = x @ W1_dst
        pltpu.VMEM((N, D), f32),   # x_lin (GAT)
        pltpu.VMEM((E, D), f32),   # gathered edge-MLP hidden
        pltpu.VMEM((E, 1), f32),   # a_edge
        pltpu.VMEM((N, 1), f32),   # a_src
        pltpu.VMEM((N, 1), f32),   # a_dst
        pltpu.VMEM((E, 1), f32),   # alpha per edge
        pltpu.VMEM((N, 1), f32),   # sum of incoming a_edge (self-loop mean fill)
        pltpu.VMEM((N, 1), f32),   # in-degree count
        pltpu.VMEM((N, 1), f32),   # running segment max
        pltpu.VMEM((N, 1), f32),   # softmax denominator
        pltpu.VMEM((N, D), f32),   # message accumulator
    ]
    return pl.pallas_call(
        fused_layer_kernel,
        out_shape=out_shape,
        in_specs=[_SMEM, _SMEM] + [_VMEM] * 15,
        out_specs=(_VMEM, _VMEM),
        scratch_shapes=scratch,
    )(src, dst, x, edge_attr,
      em["w1s"], em["w1d"], em["w1e"], em["b1"], em["w2"], em["b2"],
      gat["wt"], gat["att_src"], gat["att_dst"], aew, gat["bias"],
      bn["gamma"], bn["beta"])


def _pool_mlp_call(src, batch, edge_attr, mlp, num_graphs):
    E, D = edge_attr.shape
    f32 = jnp.float32
    return pl.pallas_call(
        pool_mlp_kernel,
        out_shape=jax.ShapeDtypeStruct((num_graphs, 1), f32),
        in_specs=[_SMEM, _SMEM] + [_VMEM] * 7,
        out_specs=_VMEM,
        scratch_shapes=[pltpu.VMEM((num_graphs, D), f32),
                        pltpu.VMEM((num_graphs, 1), f32)],
    )(src, batch, edge_attr,
      mlp["w1"], mlp["b1"], mlp["w2"], mlp["b2"], mlp["w3"], mlp["b3"])


# ----------------------------------------------------------------------------
# Parameter initialization (deterministic, synthetic, weights pre-transposed)
# ----------------------------------------------------------------------------
def init_params(key, node_feature_dim, edge_feature_dim, node_embedding_dim):
    F0, E0, D = node_feature_dim, edge_feature_dim, node_embedding_dim
    keys = iter(jax.random.split(key, 256))

    def lin_t(in_d, out_d):
        # weights stored pre-transposed as (in, out) so kernels never do `.T`
        w = jax.random.normal(next(keys), (in_d, out_d), jnp.float32) / jnp.sqrt(
            jnp.float32(in_d))
        b = 0.01 * jax.random.normal(next(keys), (1, out_d), jnp.float32)
        return w, b

    convs = []
    for i in range(NUM_LAYERS):
        nf = F0 if i == 0 else D
        ef = E0 if i == 0 else D
        w1, b1 = lin_t(2 * nf + ef, D)
        w2, b2 = lin_t(D, D)
        edge = dict(w1s=w1[:nf], w1d=w1[nf:2 * nf], w1e=w1[2 * nf:],
                    b1=b1, w2=w2, b2=b2)
        wt, _ = lin_t(nf, D)        # GAT lin (no bias)
        we, _ = lin_t(D, D)         # GAT lin_edge (no bias)
        gat = dict(
            wt=wt, we=we,
            att_src=0.1 * jax.random.normal(next(keys), (1, D), jnp.float32),
            att_dst=0.1 * jax.random.normal(next(keys), (1, D), jnp.float32),
            att_edge=0.1 * jax.random.normal(next(keys), (1, D), jnp.float32),
            bias=0.01 * jax.random.normal(next(keys), (1, D), jnp.float32),
        )
        convs.append(dict(edge=edge, gat=gat))

    batchnorms = []
    for _ in range(NUM_LAYERS - 1):
        batchnorms.append(dict(
            gamma=1.0 + 0.1 * jax.random.normal(next(keys), (1, D), jnp.float32),
            beta=0.1 * jax.random.normal(next(keys), (1, D), jnp.float32),
        ))

    mw1, mb1 = lin_t(D, D)
    mw2, mb2 = lin_t(D, D // 2)
    mw3, mb3 = lin_t(D // 2, 1)
    mlp = dict(w1=mw1, b1=mb1, w2=mw2, b2=mb2, w3=mw3, b3=mb3)
    return dict(convs=convs, batchnorms=batchnorms, mlp=mlp)


# ----------------------------------------------------------------------------
# Forward pass
# ----------------------------------------------------------------------------
def forward(params, x, edge_index, edge_attr, batch, num_graphs):
    x = x.astype(jnp.float32)
    edge_attr = edge_attr.astype(jnp.float32)
    src = edge_index[0].astype(jnp.int32)
    dst = edge_index[1].astype(jnp.int32)
    batch = batch.astype(jnp.int32)

    # NOTE: zip(convs, batchnorms) truncates to num_layers-1 iterations,
    # exactly like the PyTorch forward.
    for conv_p, bn_p in zip(params["convs"], params["batchnorms"]):
        edge_attr, x = _layer_call(src, dst, x, edge_attr,
                                   conv_p["edge"], conv_p["gat"], bn_p)

    # global_mean_pool(edge_attr, batch[edge_index[0]]) + readout MLP (one kernel)
    return _pool_mlp_call(src, batch, edge_attr, params["mlp"], num_graphs)


# ----------------------------------------------------------------------------
if __name__ == "__main__":
    # Synthetic graph batch: 2 graphs x 32 nodes, 64 edges each; D=128 lanes.
    N, B = 64, 2
    E_per_graph = 64
    F0, E0, D = 16, 16, 128   # node_feature_dim, edge_feature_dim, node_embedding_dim

    key = jax.random.PRNGKey(0)
    k1, k2, k3, k4, k5, k6 = jax.random.split(key, 6)
    x = jax.random.normal(k1, (N, F0), jnp.float32)
    src0 = jax.random.randint(k2, (E_per_graph,), 0, N // 2)
    dst0 = jax.random.randint(k3, (E_per_graph,), 0, N // 2)
    src1 = jax.random.randint(k4, (E_per_graph,), N // 2, N)
    dst1 = jax.random.randint(k5, (E_per_graph,), N // 2, N)
    edge_index = jnp.stack([jnp.concatenate([src0, src1]),
                            jnp.concatenate([dst0, dst1])]).astype(jnp.int32)
    E = edge_index.shape[1]
    edge_attr = jax.random.normal(k6, (E, E0), jnp.float32)
    batch = jnp.concatenate([jnp.zeros(N // 2, jnp.int32),
                             jnp.ones(N // 2, jnp.int32)])

    params = init_params(jax.random.PRNGKey(42), F0, E0, D)

    out = forward(params, x, edge_index, edge_attr, batch, B)
    out = jax.block_until_ready(out)
    assert out.shape == (B, 1) and out.dtype == jnp.float32
    assert bool(jnp.all(jnp.isfinite(out)))
    print("KERNEL_OK")
</pallas_src>

<mosaic_0001>
module attributes {stable_mosaic.version = 11 : i64} {
  func.func @fused_layer_kernel(%arg0: memref<128xi32, #tpu.memory_space<smem>>, %arg1: memref<128xi32, #tpu.memory_space<smem>>, %arg2: memref<64x16xf32, #tpu.memory_space<vmem>>, %arg3: memref<128x16xf32, #tpu.memory_space<vmem>>, %arg4: memref<16x128xf32, #tpu.memory_space<vmem>>, %arg5: memref<16x128xf32, #tpu.memory_space<vmem>>, %arg6: memref<16x128xf32, #tpu.memory_space<vmem>>, %arg7: memref<1x128xf32, #tpu.memory_space<vmem>>, %arg8: memref<128x128xf32, #tpu.memory_space<vmem>>, %arg9: memref<1x128xf32, #tpu.memory_space<vmem>>, %arg10: memref<16x128xf32, #tpu.memory_space<vmem>>, %arg11: memref<1x128xf32, #tpu.memory_space<vmem>>, %arg12: memref<1x128xf32, #tpu.memory_space<vmem>>, %arg13: memref<1x128xf32, #tpu.memory_space<vmem>>, %arg14: memref<1x128xf32, #tpu.memory_space<vmem>>, %arg15: memref<1x128xf32, #tpu.memory_space<vmem>>, %arg16: memref<1x128xf32, #tpu.memory_space<vmem>>, %arg17: memref<128x128xf32, #tpu.memory_space<vmem>>, %arg18: memref<64x128xf32, #tpu.memory_space<vmem>>, %arg19: memref<64x128xf32, #tpu.memory_space<vmem>>, %arg20: memref<64x128xf32, #tpu.memory_space<vmem>>, %arg21: memref<64x128xf32, #tpu.memory_space<vmem>>, %arg22: memref<128x128xf32, #tpu.memory_space<vmem>>, %arg23: memref<128x1xf32, #tpu.memory_space<vmem>>, %arg24: memref<64x1xf32, #tpu.memory_space<vmem>>, %arg25: memref<64x1xf32, #tpu.memory_space<vmem>>, %arg26: memref<128x1xf32, #tpu.memory_space<vmem>>, %arg27: memref<64x1xf32, #tpu.memory_space<vmem>>, %arg28: memref<64x1xf32, #tpu.memory_space<vmem>>, %arg29: memref<64x1xf32, #tpu.memory_space<vmem>>, %arg30: memref<64x1xf32, #tpu.memory_space<vmem>>, %arg31: memref<64x128xf32, #tpu.memory_space<vmem>>) attributes {dimension_semantics = [], scalar_prefetch = 0 : i64, scratch_operands = 13 : i64, tpu.core_type = #tpu.core_type<tc>} {
    %c0 = arith.constant 0 : index
    %c0_0 = arith.constant 0 : index
    %0 = vector.load %arg2[%c0, %c0_0] : memref<64x16xf32, #tpu.memory_space<vmem>>, vector<64x16xf32>
    %c0_1 = arith.constant 0 : index
    %c0_2 = arith.constant 0 : index
    %1 = vector.load %arg4[%c0_1, %c0_2] : memref<16x128xf32, #tpu.memory_space<vmem>>, vector<16x128xf32>
    %cst = arith.constant dense<0.000000e+00> : vector<64x128xf32>
    %2 = tpu.matmul %0, %1, %cst {dimension_numbers = #tpu.dot_dimension_numbers<[1], [0], [0], [1], [0, 0, 1, 1], [], []>} : vector<64x16xf32>, vector<16x128xf32>, vector<64x128xf32> -> vector<64x128xf32>
    %c0_3 = arith.constant 0 : index
    %c0_4 = arith.constant 0 : index
    %3 = vector.load %arg19[%c0_3, %c0_4] : memref<64x128xf32, #tpu.memory_space<vmem>>, vector<64x128xf32>
    tpu.vector_store %arg19[%c0_3, %c0_4], %2 {strides = array<i32>} : memref<64x128xf32, #tpu.memory_space<vmem>>, vector<64x128xf32>,
    %c0_5 = arith.constant 0 : index
    %c0_6 = arith.constant 0 : index
    %4 = vector.load %arg5[%c0_5, %c0_6] : memref<16x128xf32, #tpu.memory_space<vmem>>, vector<16x128xf32>
    %cst_7 = arith.constant dense<0.000000e+00> : vector<64x128xf32>
    %5 = tpu.matmul %0, %4, %cst_7 {dimension_numbers = #tpu.dot_dimension_numbers<[1], [0], [0], [1], [0, 0, 1, 1], [], []>} : vector<64x16xf32>, vector<16x128xf32>, vector<64x128xf32> -> vector<64x128xf32>
    %c0_8 = arith.constant 0 : index
    %c0_9 = arith.constant 0 : index
    %6 = vector.load %arg20[%c0_8, %c0_9] : memref<64x128xf32, #tpu.memory_space<vmem>>, vector<64x128xf32>
    tpu.vector_store %arg20[%c0_8, %c0_9], %5 {strides = array<i32>} : memref<64x128xf32, #tpu.memory_space<vmem>>, vector<64x128xf32>,
    %c0_10 = arith.constant 0 : index
    %c0_11 = arith.constant 0 : index
    %7 = vector.load %arg3[%c0_10, %c0_11] : memref<128x16xf32, #tpu.memory_space<vmem>>, vector<128x16xf32>
    %c0_12 = arith.constant 0 : index
    %c0_13 = arith.constant 0 : index
    %8 = vector.load %arg6[%c0_12, %c0_13] : memref<16x128xf32, #tpu.memory_space<vmem>>, vector<16x128xf32>
    %cst_14 = arith.constant dense<0.000000e+00> : vector<128x128xf32>
    %9 = tpu.matmul %7, %8, %cst_14 {dimension_numbers = #tpu.dot_dimension_numbers<[1], [0], [0], [1], [0, 0, 1, 1], [], []>} : vector<128x16xf32>, vector<16x128xf32>, vector<128x128xf32> -> vector<128x128xf32>
    %c0_15 = arith.constant 0 : index
    %c0_16 = arith.constant 0 : index
    %10 = vector.load %arg7[%c0_15, %c0_16] : memref<1x128xf32, #tpu.memory_space<vmem>>, vector<1x128xf32>
    %11 = vector.broadcast %10 : vector<1x128xf32> to vector<128x128xf32>
    %12 = arith.addf %9, %11 : vector<128x128xf32>
    %c0_i32 = arith.constant 0 : i32
    %c128_i32 = arith.constant 128 : i32
    %13 = arith.addi %c0_i32, %c128_i32 : i32
    %c1_i32 = arith.constant 1 : i32
    scf.for %arg32 = %c0_i32 to %13 step %c1_i32  : i32 {
      %114 = arith.index_cast %arg32 : i32 to index
      %115 = memref.load %arg0[%114] : memref<128xi32, #tpu.memory_space<smem>>
      %116 = arith.index_cast %arg32 : i32 to index
      %117 = memref.load %arg1[%116] : memref<128xi32, #tpu.memory_space<smem>>
      %118 = arith.index_cast %115 : i32 to index
      %c0_104 = arith.constant 0 : index
      %119 = vector.load %arg19[%118, %c0_104] : memref<64x128xf32, #tpu.memory_space<vmem>>, vector<1x128xf32>
      %120 = vector.shape_cast %119 : vector<1x128xf32> to vector<128xf32>
      %121 = arith.index_cast %117 : i32 to index
      %c0_105 = arith.constant 0 : index
      %122 = vector.load %arg20[%121, %c0_105] : memref<64x128xf32, #tpu.memory_space<vmem>>, vector<1x128xf32>
      %123 = vector.shape_cast %122 : vector<1x128xf32> to vector<128xf32>
      %124 = arith.addf %120, %123 : vector<128xf32>
      %125 = arith.index_cast %arg32 : i32 to index
      %c0_106 = arith.constant 0 : index
      %126 = vector.load %arg22[%125, %c0_106] : memref<128x128xf32, #tpu.memory_space<vmem>>, vector<1x128xf32>
      %127 = vector.shape_cast %126 : vector<1x128xf32> to vector<128xf32>
      %128 = vector.shape_cast %124 : vector<128xf32> to vector<1x128xf32>
      tpu.vector_store %arg22[%125, %c0_106], %128 {strides = array<i32>} : memref<128x128xf32, #tpu.memory_space<vmem>>, vector<1x128xf32>,
    }
    %c128_i32_17 = arith.constant 128 : i32
    %c0_18 = arith.constant 0 : index
    %c0_19 = arith.constant 0 : index
    %14 = vector.load %arg22[%c0_18, %c0_19] : memref<128x128xf32, #tpu.memory_space<vmem>>, vector<128x128xf32>
    %15 = arith.addf %14, %12 : vector<128x128xf32>
    %cst_20 = arith.constant 0.000000e+00 : f32
    %16 = vector.broadcast %cst_20 : f32 to vector<128x128xf32>
    %17 = arith.maximumf %15, %16 : vector<128x128xf32>
    %c0_21 = arith.constant 0 : index
    %c0_22 = arith.constant 0 : index
    %18 = vector.load %arg8[%c0_21, %c0_22] : memref<128x128xf32, #tpu.memory_space<vmem>>, vector<128x128xf32>
    %cst_23 = arith.constant dense<0.000000e+00> : vector<128x128xf32>
    %19 = tpu.matmul %17, %18, %cst_23 {dimension_numbers = #tpu.dot_dimension_numbers<[1], [0], [0], [1], [0, 0, 1, 1], [], []>} : vector<128x128xf32>, vector<128x128xf32>, vector<128x128xf32> -> vector<128x128xf32>
    %c0_24 = arith.constant 0 : index
    %c0_25 = arith.constant 0 : index
    %20 = vector.load %arg9[%c0_24, %c0_25] : memref<1x128xf32, #tpu.memory_space<vmem>>, vector<1x128xf32>
    %21 = vector.broadcast %20 : vector<1x128xf32> to vector<128x128xf32>
    %22 = arith.addf %19, %21 : vector<128x128xf32>
    %c0_26 = arith.constant 0 : index
    %c0_27 = arith.constant 0 : index
    %23 = vector.load %arg17[%c0_26, %c0_27] : memref<128x128xf32, #tpu.memory_space<vmem>>, vector<128x128xf32>
    tpu.vector_store %arg17[%c0_26, %c0_27], %22 {strides = array<i32>} : memref<128x128xf32, #tpu.memory_space<vmem>>, vector<128x128xf32>,
    %c0_28 = arith.constant 0 : index
    %c0_29 = arith.constant 0 : index
    %24 = vector.load %arg10[%c0_28, %c0_29] : memref<16x128xf32, #tpu.memory_space<vmem>>, vector<16x128xf32>
    %cst_30 = arith.constant dense<0.000000e+00> : vector<64x128xf32>
    %25 = tpu.matmul %0, %24, %cst_30 {dimension_numbers = #tpu.dot_dimension_numbers<[1], [0], [0], [1], [0, 0, 1, 1], [], []>} : vector<64x16xf32>, vector<16x128xf32>, vector<64x128xf32> -> vector<64x128xf32>
    %c0_31 = arith.constant 0 : index
    %c0_32 = arith.constant 0 : index
    %26 = vector.load %arg21[%c0_31, %c0_32] : memref<64x128xf32, #tpu.memory_space<vmem>>, vector<64x128xf32>
    tpu.vector_store %arg21[%c0_31, %c0_32], %25 {strides = array<i32>} : memref<64x128xf32, #tpu.memory_space<vmem>>, vector<64x128xf32>,
    %c0_33 = arith.constant 0 : index
    %c0_34 = arith.constant 0 : index
    %27 = vector.load %arg11[%c0_33, %c0_34] : memref<1x128xf32, #tpu.memory_space<vmem>>, vector<1x128xf32>
    %28 = vector.broadcast %27 : vector<1x128xf32> to vector<64x128xf32>
    %29 = arith.mulf %25, %28 : vector<64x128xf32>
    %cst_35 = arith.constant dense<0.000000e+00> : vector<64xf32>
    %30 = vector.multi_reduction <add>, %29, %cst_35 [1] : vector<64x128xf32> to vector<64xf32>
    %31 = vector.shape_cast %30 : vector<64xf32> to vector<64x1xf32>
    %c0_36 = arith.constant 0 : index
    %c0_37 = arith.constant 0 : index
    %32 = vector.load %arg24[%c0_36, %c0_37] : memref<64x1xf32, #tpu.memory_space<vmem>>, vector<64x1xf32>
    tpu.vector_store %arg24[%c0_36, %c0_37], %31 {strides = array<i32>} : memref<64x1xf32, #tpu.memory_space<vmem>>, vector<64x1xf32>,
    %c0_38 = arith.constant 0 : index
    %c0_39 = arith.constant 0 : index
    %33 = vector.load %arg12[%c0_38, %c0_39] : memref<1x128xf32, #tpu.memory_space<vmem>>, vector<1x128xf32>
    %34 = vector.broadcast %33 : vector<1x128xf32> to vector<64x128xf32>
    %35 = arith.mulf %25, %34 : vector<64x128xf32>
    %cst_40 = arith.constant dense<0.000000e+00> : vector<64xf32>
    %36 = vector.multi_reduction <add>, %35, %cst_40 [1] : vector<64x128xf32> to vector<64xf32>
    %37 = vector.shape_cast %36 : vector<64xf32> to vector<64x1xf32>
    %c0_41 = arith.constant 0 : index
    %c0_42 = arith.constant 0 : index
    %38 = vector.load %arg25[%c0_41, %c0_42] : memref<64x1xf32, #tpu.memory_space<vmem>>, vector<64x1xf32>
    tpu.vector_store %arg25[%c0_41, %c0_42], %37 {strides = array<i32>} : memref<64x1xf32, #tpu.memory_space<vmem>>, vector<64x1xf32>,
    %c0_43 = arith.constant 0 : index
    %c0_44 = arith.constant 0 : index
    %39 = vector.load %arg13[%c0_43, %c0_44] : memref<1x128xf32, #tpu.memory_space<vmem>>, vector<1x128xf32>
    %40 = vector.broadcast %39 : vector<1x128xf32> to vector<128x128xf32>
    %41 = arith.mulf %22, %40 : vector<128x128xf32>
    %cst_45 = arith.constant dense<0.000000e+00> : vector<128xf32>
    %42 = vector.multi_reduction <add>, %41, %cst_45 [1] : vector<128x128xf32> to vector<128xf32>
    %43 = vector.shape_cast %42 : vector<128xf32> to vector<128x1xf32>
    %c0_46 = arith.constant 0 : index
    %c0_47 = arith.constant 0 : index
    %44 = vector.load %arg23[%c0_46, %c0_47] : memref<128x1xf32, #tpu.memory_space<vmem>>, vector<128x1xf32>
    tpu.vector_store %arg23[%c0_46, %c0_47], %43 {strides = array<i32>} : memref<128x1xf32, #tpu.memory_space<vmem>>, vector<128x1xf32>,
    %cst_48 = arith.constant 0.000000e+00 : f32
    %45 = vector.broadcast %cst_48 : f32 to vector<64x1xf32>
    %c0_49 = arith.constant 0 : index
    %c0_50 = arith.constant 0 : index
    %46 = vector.load %arg27[%c0_49, %c0_50] : memref<64x1xf32, #tpu.memory_space<vmem>>, vector<64x1xf32>
    tpu.vector_store %arg27[%c0_49, %c0_50], %45 {strides = array<i32>} : memref<64x1xf32, #tpu.memory_space<vmem>>, vector<64x1xf32>,
    %cst_51 = arith.constant 0.000000e+00 : f32
    %47 = vector.broadcast %cst_51 : f32 to vector<64x1xf32>
    %c0_52 = arith.constant 0 : index
    %c0_53 = arith.constant 0 : index
    %48 = vector.load %arg28[%c0_52, %c0_53] : memref<64x1xf32, #tpu.memory_space<vmem>>, vector<64x1xf32>
    tpu.vector_store %arg28[%c0_52, %c0_53], %47 {strides = array<i32>} : memref<64x1xf32, #tpu.memory_space<vmem>>, vector<64x1xf32>,
    %cst_54 = arith.constant -1.000000e+30 : f32
    %49 = vector.broadcast %cst_54 : f32 to vector<64x1xf32>
    %c0_55 = arith.constant 0 : index
    %c0_56 = arith.constant 0 : index
    %50 = vector.load %arg29[%c0_55, %c0_56] : memref<64x1xf32, #tpu.memory_space<vmem>>, vector<64x1xf32>
    tpu.vector_store %arg29[%c0_55, %c0_56], %49 {strides = array<i32>} : memref<64x1xf32, #tpu.memory_space<vmem>>, vector<64x1xf32>,
    %c0_i32_57 = arith.constant 0 : i32
    %c128_i32_58 = arith.constant 128 : i32
    %51 = arith.addi %c0_i32_57, %c128_i32_58 : i32
    %c1_i32_59 = arith.constant 1 : i32
    scf.for %arg32 = %c0_i32_57 to %51 step %c1_i32_59  : i32 {
      %114 = arith.index_cast %arg32 : i32 to index
      %115 = memref.load %arg0[%114] : memref<128xi32, #tpu.memory_space<smem>>
      %116 = arith.index_cast %arg32 : i32 to index
      %117 = memref.load %arg1[%116] : memref<128xi32, #tpu.memory_space<smem>>
      %118 = arith.index_cast %arg32 : i32 to index
      %c0_104 = arith.constant 0 : index
      %119 = vector.load %arg23[%118, %c0_104] : memref<128x1xf32, #tpu.memory_space<vmem>>, vector<1x1xf32>
      %120 = vector.shape_cast %119 : vector<1x1xf32> to vector<1xf32>
      %121 = arith.index_cast %115 : i32 to index
      %c0_105 = arith.constant 0 : index
      %122 = vector.load %arg24[%121, %c0_105] : memref<64x1xf32, #tpu.memory_space<vmem>>, vector<1x1xf32>
      %123 = vector.shape_cast %122 : vector<1x1xf32> to vector<1xf32>
      %124 = arith.index_cast %117 : i32 to index
      %c0_106 = arith.constant 0 : index
      %125 = vector.load %arg25[%124, %c0_106] : memref<64x1xf32, #tpu.memory_space<vmem>>, vector<1x1xf32>
      %126 = vector.shape_cast %125 : vector<1x1xf32> to vector<1xf32>
      %127 = arith.addf %123, %126 : vector<1xf32>
      %128 = arith.addf %127, %120 : vector<1xf32>
      %cst_107 = arith.constant 0.000000e+00 : f32
      %129 = vector.broadcast %cst_107 : f32 to vector<1xf32>
      %130 = arith.cmpf ogt, %128, %129 : vector<1xf32>
      %cst_108 = arith.constant 2.000000e-01 : f32
      %131 = vector.broadcast %cst_108 : f32 to vector<1xf32>
      %132 = arith.mulf %131, %128 : vector<1xf32>
      %133 = arith.select %130, %128, %132 : vector<1xi1>, vector<1xf32>
      %134 = arith.index_cast %arg32 : i32 to index
      %c0_109 = arith.constant 0 : index
      %135 = vector.load %arg26[%134, %c0_109] : memref<128x1xf32, #tpu.memory_space<vmem>>, vector<1x1xf32>
      %136 = vector.shape_cast %135 : vector<1x1xf32> to vector<1xf32>
      %137 = vector.shape_cast %133 : vector<1xf32> to vector<1x1xf32>
      tpu.vector_store %arg26[%134, %c0_109], %137 {strides = array<i32>} : memref<128x1xf32, #tpu.memory_space<vmem>>, vector<1x1xf32>,
      %138 = arith.index_cast %117 : i32 to index
      %c0_110 = arith.constant 0 : index
      %139 = vector.load %arg27[%138, %c0_110] : memref<64x1xf32, #tpu.memory_space<vmem>>, vector<1x1xf32>
      %140 = vector.shape_cast %139 : vector<1x1xf32> to vector<1xf32>
      %141 = arith.addf %140, %120 : vector<1xf32>
      %142 = arith.index_cast %117 : i32 to index
      %c0_111 = arith.constant 0 : index
      %143 = vector.load %arg27[%142, %c0_111] : memref<64x1xf32, #tpu.memory_space<vmem>>, vector<1x1xf32>
      %144 = vector.shape_cast %143 : vector<1x1xf32> to vector<1xf32>
      %145 = vector.shape_cast %141 : vector<1xf32> to vector<1x1xf32>
      tpu.vector_store %arg27[%142, %c0_111], %145 {strides = array<i32>} : memref<64x1xf32, #tpu.memory_space<vmem>>, vector<1x1xf32>,
      %146 = arith.index_cast %117 : i32 to index
      %c0_112 = arith.constant 0 : index
      %147 = vector.load %arg28[%146, %c0_112] : memref<64x1xf32, #tpu.memory_space<vmem>>, vector<1x1xf32>
      %148 = vector.shape_cast %147 : vector<1x1xf32> to vector<1xf32>
      %cst_113 = arith.constant 1.000000e+00 : f32
      %149 = vector.broadcast %cst_113 : f32 to vector<1xf32>
      %150 = arith.addf %148, %149 : vector<1xf32>
      %151 = arith.index_cast %117 : i32 to index
      %c0_114 = arith.constant 0 : index
      %152 = vector.load %arg28[%151, %c0_114] : memref<64x1xf32, #tpu.memory_space<vmem>>, vector<1x1xf32>
      %153 = vector.shape_cast %152 : vector<1x1xf32> to vector<1xf32>
      %154 = vector.shape_cast %150 : vector<1xf32> to vector<1x1xf32>
      tpu.vector_store %arg28[%151, %c0_114], %154 {strides = array<i32>} : memref<64x1xf32, #tpu.memory_space<vmem>>, vector<1x1xf32>,
      %155 = arith.index_cast %117 : i32 to index
      %c0_115 = arith.constant 0 : index
      %156 = vector.load %arg29[%155, %c0_115] : memref<64x1xf32, #tpu.memory_space<vmem>>, vector<1x1xf32>
      %157 = vector.shape_cast %156 : vector<1x1xf32> to vector<1xf32>
      %158 = arith.maximumf %157, %133 : vector<1xf32>
      %159 = arith.index_cast %117 : i32 to index
      %c0_116 = arith.constant 0 : index
      %160 = vector.load %arg29[%159, %c0_116] : memref<64x1xf32, #tpu.memory_space<vmem>>, vector<1x1xf32>
      %161 = vector.shape_cast %160 : vector<1x1xf32> to vector<1xf32>
      %162 = vector.shape_cast %158 : vector<1xf32> to vector<1x1xf32>
      tpu.vector_store %arg29[%159, %c0_116], %162 {strides = array<i32>} : memref<64x1xf32, #tpu.memory_space<vmem>>, vector<1x1xf32>,
    }
    %c128_i32_60 = arith.constant 128 : i32
    %c0_61 = arith.constant 0 : index
    %c0_62 = arith.constant 0 : index
    %52 = vector.load %arg28[%c0_61, %c0_62] : memref<64x1xf32, #tpu.memory_space<vmem>>, vector<64x1xf32>
    %cst_63 = arith.constant 0.000000e+00 : f32
    %53 = vector.broadcast %cst_63 : f32 to vector<64x1xf32>
    %54 = arith.cmpf ogt, %52, %53 : vector<64x1xf32>
    %c0_64 = arith.constant 0 : index
    %c0_65 = arith.constant 0 : index
    %55 = vector.load %arg27[%c0_64, %c0_65] : memref<64x1xf32, #tpu.memory_space<vmem>>, vector<64x1xf32>
    %cst_66 = arith.constant 1.000000e+00 : f32
    %56 = vector.broadcast %cst_66 : f32 to vector<64x1xf32>
    %57 = arith.maximumf %52, %56 : vector<64x1xf32>
    %58 = arith.divf %55, %57 : vector<64x1xf32>
    %cst_67 = arith.constant 0.000000e+00 : f32
    %59 = vector.broadcast %cst_67 : f32 to vector<64x1xf32>
    %60 = arith.select %54, %58, %59 : vector<64x1xi1>, vector<64x1xf32>
    %c0_68 = arith.constant 0 : index
    %c0_69 = arith.constant 0 : index
    %61 = vector.load %arg24[%c0_68, %c0_69] : memref<64x1xf32, #tpu.memory_space<vmem>>, vector<64x1xf32>
    %c0_70 = arith.constant 0 : index
    %c0_71 = arith.constant 0 : index
    %62 = vector.load %arg25[%c0_70, %c0_71] : memref<64x1xf32, #tpu.memory_space<vmem>>, vector<64x1xf32>
    %63 = arith.addf %61, %62 : vector<64x1xf32>
    %64 = arith.addf %63, %60 : vector<64x1xf32>
    %cst_72 = arith.constant 0.000000e+00 : f32
    %65 = vector.broadcast %cst_72 : f32 to vector<64x1xf32>
    %66 = arith.cmpf ogt, %64, %65 : vector<64x1xf32>
    %cst_73 = arith.constant 2.000000e-01 : f32
    %67 = vector.broadcast %cst_73 : f32 to vector<64x1xf32>
    %68 = arith.mulf %67, %64 : vector<64x1xf32>
    %69 = arith.select %66, %64, %68 : vector<64x1xi1>, vector<64x1xf32>
    %c0_74 = arith.constant 0 : index
    %c0_75 = arith.constant 0 : index
    %70 = vector.load %arg29[%c0_74, %c0_75] : memref<64x1xf32, #tpu.memory_space<vmem>>, vector<64x1xf32>
    %71 = arith.maximumf %70, %69 : vector<64x1xf32>
    %c0_76 = arith.constant 0 : index
    %c0_77 = arith.constant 0 : index
    %72 = vector.load %arg29[%c0_76, %c0_77] : memref<64x1xf32, #tpu.memory_space<vmem>>, vector<64x1xf32>
    tpu.vector_store %arg29[%c0_76, %c0_77], %71 {strides = array<i32>} : memref<64x1xf32, #tpu.memory_space<vmem>>, vector<64x1xf32>,
    %73 = arith.subf %69, %71 : vector<64x1xf32>
    %74 = math.exp %73 : vector<64x1xf32>
    %c0_78 = arith.constant 0 : index
    %c0_79 = arith.constant 0 : index
    %75 = vector.load %arg30[%c0_78, %c0_79] : memref<64x1xf32, #tpu.memory_space<vmem>>, vector<64x1xf32>
    tpu.vector_store %arg30[%c0_78, %c0_79], %74 {strides = array<i32>} : memref<64x1xf32, #tpu.memory_space<vmem>>, vector<64x1xf32>,
    %76 = vector.broadcast %74 : vector<64x1xf32> to vector<64x128xf32>
    %77 = arith.mulf %76, %25 : vector<64x128xf32>
    %c0_80 = arith.constant 0 : index
    %c0_81 = arith.constant 0 : index
    %78 = vector.load %arg31[%c0_80, %c0_81] : memref<64x128xf32, #tpu.memory_space<vmem>>, vector<64x128xf32>
    tpu.vector_store %arg31[%c0_80, %c0_81], %77 {strides = array<i32>} : memref<64x128xf32, #tpu.memory_space<vmem>>, vector<64x128xf32>,
    %c0_i32_82 = arith.constant 0 : i32
    %c128_i32_83 = arith.constant 128 : i32
    %79 = arith.addi %c0_i32_82, %c128_i32_83 : i32
    %c1_i32_84 = arith.constant 1 : i32
    scf.for %arg32 = %c0_i32_82 to %79 step %c1_i32_84  : i32 {
      %114 = arith.index_cast %arg32 : i32 to index
      %115 = memref.load %arg0[%114] : memref<128xi32, #tpu.memory_space<smem>>
      %116 = arith.index_cast %arg32 : i32 to index
      %117 = memref.load %arg1[%116] : memref<128xi32, #tpu.memory_space<smem>>
      %118 = arith.index_cast %arg32 : i32 to index
      %c0_104 = arith.constant 0 : index
      %119 = vector.load %arg26[%118, %c0_104] : memref<128x1xf32, #tpu.memory_space<vmem>>, vector<1x1xf32>
      %120 = vector.shape_cast %119 : vector<1x1xf32> to vector<1xf32>
      %121 = arith.index_cast %117 : i32 to index
      %c0_105 = arith.constant 0 : index
      %122 = vector.load %arg29[%121, %c0_105] : memref<64x1xf32, #tpu.memory_space<vmem>>, vector<1x1xf32>
      %123 = vector.shape_cast %122 : vector<1x1xf32> to vector<1xf32>
      %124 = arith.subf %120, %123 : vector<1xf32>
      %125 = math.exp %124 : vector<1xf32>
      %126 = arith.index_cast %117 : i32 to index
      %c0_106 = arith.constant 0 : index
      %127 = vector.load %arg30[%126, %c0_106] : memref<64x1xf32, #tpu.memory_space<vmem>>, vector<1x1xf32>
      %128 = vector.shape_cast %127 : vector<1x1xf32> to vector<1xf32>
      %129 = arith.addf %128, %125 : vector<1xf32>
      %130 = arith.index_cast %117 : i32 to index
      %c0_107 = arith.constant 0 : index
      %131 = vector.load %arg30[%130, %c0_107] : memref<64x1xf32, #tpu.memory_space<vmem>>, vector<1x1xf32>
      %132 = vector.shape_cast %131 : vector<1x1xf32> to vector<1xf32>
      %133 = vector.shape_cast %129 : vector<1xf32> to vector<1x1xf32>
      tpu.vector_store %arg30[%130, %c0_107], %133 {strides = array<i32>} : memref<64x1xf32, #tpu.memory_space<vmem>>, vector<1x1xf32>,
      %134 = arith.index_cast %117 : i32 to index
      %c0_108 = arith.constant 0 : index
      %135 = vector.load %arg31[%134, %c0_108] : memref<64x128xf32, #tpu.memory_space<vmem>>, vector<1x128xf32>
      %136 = vector.shape_cast %135 : vector<1x128xf32> to vector<128xf32>
      %137 = arith.index_cast %115 : i32 to index
      %c0_109 = arith.constant 0 : index
      %138 = vector.load %arg21[%137, %c0_109] : memref<64x128xf32, #tpu.memory_space<vmem>>, vector<1x128xf32>
      %139 = vector.shape_cast %138 : vector<1x128xf32> to vector<128xf32>
      %140 = vector.broadcast %125 : vector<1xf32> to vector<128xf32>
      %141 = arith.mulf %140, %139 : vector<128xf32>
      %142 = arith.addf %136, %141 : vector<128xf32>
      %143 = arith.index_cast %117 : i32 to index
      %c0_110 = arith.constant 0 : index
      %144 = vector.load %arg31[%143, %c0_110] : memref<64x128xf32, #tpu.memory_space<vmem>>, vector<1x128xf32>
      %145 = vector.shape_cast %144 : vector<1x128xf32> to vector<128xf32>
      %146 = vector.shape_cast %142 : vector<128xf32> to vector<1x128xf32>
      tpu.vector_store %arg31[%143, %c0_110], %146 {strides = array<i32>} : memref<64x128xf32, #tpu.memory_space<vmem>>, vector<1x128xf32>,
    }
    %c128_i32_85 = arith.constant 128 : i32
    %c0_86 = arith.constant 0 : index
    %c0_87 = arith.constant 0 : index
    %80 = vector.load %arg31[%c0_86, %c0_87] : memref<64x128xf32, #tpu.memory_space<vmem>>, vector<64x128xf32>
    %c0_88 = arith.constant 0 : index
    %c0_89 = arith.constant 0 : index
    %81 = vector.load %arg30[%c0_88, %c0_89] : memref<64x1xf32, #tpu.memory_space<vmem>>, vector<64x1xf32>
    %82 = vector.broadcast %81 : vector<64x1xf32> to vector<64x128xf32>
    %83 = arith.divf %80, %82 : vector<64x128xf32>
    %c0_90 = arith.constant 0 : index
    %c0_91 = arith.constant 0 : index
    %84 = vector.load %arg14[%c0_90, %c0_91] : memref<1x128xf32, #tpu.memory_space<vmem>>, vector<1x128xf32>
    %85 = vector.broadcast %84 : vector<1x128xf32> to vector<64x128xf32>
    %86 = arith.addf %83, %85 : vector<64x128xf32>
    %cst_92 = arith.constant dense<0.000000e+00> : vector<128xf32>
    %87 = vector.multi_reduction <add>, %86, %cst_92 [0] : vector<64x128xf32> to vector<128xf32>
    %88 = vector.shape_cast %87 : vector<128xf32> to vector<1x128xf32>
    %cst_93 = arith.constant 6.400000e+01 : f32
    %89 = vector.broadcast %cst_93 : f32 to vector<1x128xf32>
    %90 = arith.divf %88, %89 : vector<1x128xf32>
    %91 = vector.broadcast %90 : vector<1x128xf32> to vector<64x128xf32>
    %92 = arith.subf %86, %91 : vector<64x128xf32>
    %93 = arith.mulf %92, %92 : vector<64x128xf32>
    %cst_94 = arith.constant dense<0.000000e+00> : vector<128xf32>
    %94 = vector.multi_reduction <add>, %93, %cst_94 [0] : vector<64x128xf32> to vector<128xf32>
    %95 = vector.shape_cast %94 : vector<128xf32> to vector<1x128xf32>
    %cst_95 = arith.constant 6.400000e+01 : f32
    %96 = vector.broadcast %cst_95 : f32 to vector<1x128xf32>
    %97 = arith.divf %95, %96 : vector<1x128xf32>
    %98 = vector.broadcast %90 : vector<1x128xf32> to vector<64x128xf32>
    %99 = arith.subf %86, %98 : vector<64x128xf32>
    %cst_96 = arith.constant 9.99999974E-6 : f32
    %100 = vector.broadcast %cst_96 : f32 to vector<1x128xf32>
    %101 = arith.addf %97, %100 : vector<1x128xf32>
    %102 = math.rsqrt %101 : vector<1x128xf32>
    %103 = vector.broadcast %102 : vector<1x128xf32> to vector<64x128xf32>
    %104 = arith.mulf %99, %103 : vector<64x128xf32>
    %c0_97 = arith.constant 0 : index
    %c0_98 = arith.constant 0 : index
    %105 = vector.load %arg15[%c0_97, %c0_98] : memref<1x128xf32, #tpu.memory_space<vmem>>, vector<1x128xf32>
    %106 = vector.broadcast %105 : vector<1x128xf32> to vector<64x128xf32>
    %107 = arith.mulf %104, %106 : vector<64x128xf32>
    %c0_99 = arith.constant 0 : index
    %c0_100 = arith.constant 0 : index
    %108 = vector.load %arg16[%c0_99, %c0_100] : memref<1x128xf32, #tpu.memory_space<vmem>>, vector<1x128xf32>
    %109 = vector.broadcast %108 : vector<1x128xf32> to vector<64x128xf32>
    %110 = arith.addf %107, %109 : vector<64x128xf32>
    %cst_101 = arith.constant 0.000000e+00 : f32
    %111 = vector.broadcast %cst_101 : f32 to vector<64x128xf32>
    %112 = arith.maximumf %110, %111 : vector<64x128xf32>
    %c0_102 = arith.constant 0 : index
    %c0_103 = arith.constant 0 : index
    %113 = vector.load %arg18[%c0_102, %c0_103] : memref<64x128xf32, #tpu.memory_space<vmem>>, vector<64x128xf32>
    tpu.vector_store %arg18[%c0_102, %c0_103], %112 {strides = array<i32>} : memref<64x128xf32, #tpu.memory_space<vmem>>, vector<64x128xf32>,
    return
  }
}

</mosaic_0001>

<bundles_post_ra>
// kernel: tpu_custom_call.1
= control target key start
LH: loop header
LB: loop body
LE: loop exit
PB: predicated region body
PF: predicated region fallthrough
CT: control target
= control target key end

     0   :  { %s2803_s0 = inlined_call_operand.vmem [shape: s32[128], index: 0, kind: input, shape index: {}]   ;;  %s2804_s1 = inlined_call_operand.vmem [shape: s32[128], index: 1, kind: input, shape index: {}]   ;;  %s2805_s2 = inlined_call_operand.vmem [shape: f32[64,16], index: 2, kind: input, shape index: {}]   ;;  %s2806_s3 = inlined_call_operand.vmem [shape: f32[128,16], index: 3, kind: input, shape index: {}]   ;;  %s2807_s4 = inlined_call_operand.vmem [shape: f32[16,128], index: 4, kind: input, shape index: {}]   ;;  %s2808_s5 = inlined_call_operand.vmem [shape: f32[16,128], index: 5, kind: input, shape index: {}]   ;;  %s2809_s6 = inlined_call_operand.vmem [shape: f32[16,128], index: 6, kind: input, shape index: {}]   ;;  %s2810_s7 = inlined_call_operand.vmem [shape: f32[1,128], index: 7, kind: input, shape index: {}]   ;;  %s2811_s8 = inlined_call_operand.vmem [shape: f32[128,128], index: 8, kind: input, shape index: {}]   ;;  %s2812_s9 = inlined_call_operand.vmem [shape: f32[1,128], index: 9, kind: input, shape index: {}]   ;;  %s2813_s10 = inlined_call_operand.vmem [shape: f32[16,128], index: 10, kind: input, shape index: {}]   ;;  %s2814_s11 = inlined_call_operand.vmem [shape: f32[1,128], index: 11, kind: input, shape index: {}]   ;;  %s2815_s12 = inlined_call_operand.vmem [shape: f32[1,128], index: 12, kind: input, shape index: {}]   ;;  %s2816_s13 = inlined_call_operand.vmem [shape: f32[1,128], index: 13, kind: input, shape index: {}]   ;;  %s2817_s14 = inlined_call_operand.vmem [shape: f32[1,128], index: 14, kind: input, shape index: {}]   ;;  %s2818_s15 = inlined_call_operand.vmem [shape: f32[1,128], index: 15, kind: input, shape index: {}]   ;;  %s2819_s16 = inlined_call_operand.vmem [shape: f32[1,128], index: 16, kind: input, shape index: {}]   ;;  %s2820_s17 = inlined_call_operand.hbm [shape: f32[128,128], index: 17, kind: output, shape index: {0}]   ;;  %s2821_s18 = inlined_call_operand.hbm [shape: f32[64,128], index: 18, kind: output, shape index: {1}]  }
   0x1   :  { %2823 = sst [smem:[#allocation27_spill]] %s2803_s0 }
   0x2   :  { %2824 = sst [smem:[#allocation28_spill]] %s2804_s1 }
   0x3   :  { %2825 = sst [smem:[#allocation29_spill]] %s2805_s2 }
   0x4   :  { %24 = vsyncpa [#allocation17], 0 }
   0x5   :  { %25 = vsyncpa [#allocation19], 0 }
   0x6   :  { %26 = vsyncpa [#allocation16], 0 }
   0x7   :  { %27 = vsyncpa [#allocation22], 0  ;;  %s2826_s29 = sld [smem:[#allocation27_spill]]  ;;  %s2827_s1 = sld [smem:[#allocation28_spill]] }
   0xd   :  { %s34_s30 = sshll.u32 %s2826_s29, 4  ;;  %s44_s20 = sshll.u32 %s2827_s1, 4  ;;  %s35_s30 = int_to_ptr.vmem [resolvable:$true] %s34_s30  ;;  %s45_s20 = int_to_ptr.vmem [resolvable:$true] %s44_s20 }
   0xe   :  { %s2043_s21 = scalar_lea.vmem %s35_s30, 16  ;;  %p2048_p1 = scmp.lt.s32.totalorder %s35_s30, %s35_s30 }
   0xf   :  { %p2044_p0 = scmp.ne.s32.totalorder %s35_s30, %s2043_s21  ;;  %p2049_p2 = scmp.lt.s32.totalorder %s2043_s21, %s2043_s21 }
  0x11   :  { %p2050_p3 = por %p2049_p2, %p2048_p1 }
  0x13   :  { %p2051_p4 = pnand %p2050_p3, %p2044_p0 }
  0x15   :  { %2054 = shalt.err (!%p2051_p4)
}
  0x16   :  { %s2143_s22 = smov [#allocation15]   ;;  %s2055_s2 = scalar_lea.vmem %s45_s20, 16 }
  0x17   :  { %37 = dma.vmem_to_smem %s35_s30, 16, %s2143_s22, [#allocation17]  }
  0x18   :  { %p2056_p5 = scmp.ne.s32.totalorder %s45_s20, %s2055_s2  ;;  %p2060_p6 = scmp.lt.s32.totalorder %s45_s20, %s45_s20 }
  0x19   :  { %p2061_p7 = scmp.lt.s32.totalorder %s2055_s2, %s2055_s2 }
  0x1b   :  { %p2062_p8 = por %p2061_p7, %p2060_p6 }
  0x1d   :  { %p2063_p9 = pnand %p2062_p8, %p2056_p5 }
  0x1f   :  { %2066 = shalt.err (!%p2063_p9)
}
  0x20   :  { %s2144_s23 = smov [#allocation18]  }
  0x21   :  { %47 = dma.vmem_to_smem %s45_s20, 16, %s2144_s23, [#allocation19]  }
  0x22   :  { %2123 = dma.done.wait [#allocation17], 16  }
  0x23   :  { %2124 = vsyncadd [#allocation17], 4294967280 }
  0x24   :  { %2125 = dma.done.wait [#allocation19], 16  }
  0x25   :  { %2126 = vsyncadd [#allocation19], 4294967280 }
  0x26   :  { %84 = sfence }
  0x27   :  { %v93_v0 = vld [vmem:[%s2807_s4] sm:$0xff]  ;;  %v94_v1 = vld [vmem:[%s2807_s4 + $0x8] sm:$0xff]  ;;  %s2828_s30 = sld [smem:[#allocation29_spill]]  ;;  %vm95_vm0 = vcmask 130048   ;;  %v350_v19 = vld [vmem:[%s2806_s3 + $0x10] sm:$0xff] }
  0x28   :  { %v1904_v3 = vpack.c.bf16 %v94_v1, %v93_v0  ;;  %v364_v4 = vld [vmem:[%s2809_s6] sm:$0xff]  ;;  %v365_v5 = vld [vmem:[%s2809_s6 + $0x8] sm:$0xff]  ;;  %v351_v20 = vld [vmem:[%s2806_s3 + $0x18] sm:$0xff] }
  0x29   :  { %v1912_v6 = vpack.c.bf16 %v365_v5, %v364_v4  ;;  %v233_v9 = vld [vmem:[%s2808_s5] sm:$0xff]  ;;  %v234_v10 = vld [vmem:[%s2808_s5 + $0x8] sm:$0xff]  ;;  %v354_v23 = vld [vmem:[%s2806_s3 + $0x30] sm:$0xff] }
  0x2a   :  { %1905 = vmatprep.subr.bf16.mxu0 %v1904_v3  ;;  %v1908_v11 = vpack.c.bf16 %v234_v10, %v233_v9  ;;  %v348_v17 = vld [vmem:[%s2806_s3] sm:$0xff]  ;;  %v349_v18 = vld [vmem:[%s2806_s3 + $0x8] sm:$0xff]  ;;  %v355_v24 = vld [vmem:[%s2806_s3 + $0x38] sm:$0xff] }
  0x2b   :  { %1907 = vmatpush3.bf16.msra.mxu0 %v1904_v3  ;;  %v352_v21 = vld [vmem:[%s2806_s3 + $0x20] sm:$0xff]  ;;  %v353_v22 = vld [vmem:[%s2806_s3 + $0x28] sm:$0xff]  ;;  %v358_v27 = vld [vmem:[%s2806_s3 + $0x50] sm:$0xff] }
  0x2c   :  { %1913 = vmatprep.subr.bf16.mxu0 %v1912_v6  ;;  %1909 = vmatprep.subr.bf16.mxu1 %v1908_v11  ;;  %v356_v25 = vld [vmem:[%s2806_s3 + $0x40] sm:$0xff]  ;;  %v357_v26 = vld [vmem:[%s2806_s3 + $0x48] sm:$0xff]  ;;  %v359_v28 = vld [vmem:[%s2806_s3 + $0x58] sm:$0xff] }
  0x2d   :  { %v2263_v2 = vld [vmem:[%s2828_s30] sm:$0xff]  ;;  %v2278_v7 = vld [vmem:[%s2828_s30 + $0x8] sm:$0xff]  ;;  %v2283_v8 = vld [vmem:[%s2828_s30 + $0x10] sm:$0xff]  ;;  %1911 = vmatpush3.bf16.msra.mxu1 %v1908_v11 }
  0x2e   :  { %1776 = vmatprep.mubr.msk.f32.mxu0 %vm95_vm0, %v2263_v2  ;;  %1792 = vmatprep.mubr.msk.f32.mxu1 %vm95_vm0, %v2263_v2  ;;  %v2298_v12 = vld [vmem:[%s2828_s30 + $0x18] sm:$0xff]  ;;  %v2303_v13 = vld [vmem:[%s2828_s30 + $0x20] sm:$0xff]  ;;  %v2312_v14 = vld [vmem:[%s2828_s30 + $0x28] sm:$0xff] }
  0x2f   :  { %1777 = vmatmul.mubr.msk.f32.vlgmr.msra.gmra.mrb[0].mxu0 %vm95_vm0, %v2278_v7  ;;  %v2317_v15 = vld [vmem:[%s2828_s30 + $0x30] sm:$0xff]  ;;  %v2330_v16 = vld [vmem:[%s2828_s30 + $0x38] sm:$0xff]  ;;  %v360_v29 = vld [vmem:[%s2806_s3 + $0x60] sm:$0xff] }
  0x30   :  { %1915 = vmatpush3.bf16.msra.mxu0 %v1912_v6  ;;  %1779 = vmatprep.mubr.msk.f32.mxu0 %vm95_vm0, %v2283_v8  ;;  %v361_v30 = vld [vmem:[%s2806_s3 + $0x68] sm:$0xff]  ;;  %v362_v31 = vld [vmem:[%s2806_s3 + $0x70] sm:$0xff]  ;;  %v363_v32 = vld [vmem:[%s2806_s3 + $0x78] sm:$0xff] }
  0x31   :  { %1793 = vmatmul.mubr.msk.f32.vlgmr.msra.gmra.mrb[0].mxu1 %vm95_vm0, %v2278_v7  ;;  %v1660_v45 = vld [vmem:[%s2810_s7] ss:$0 sm:$0xff]  ;;  %s2131_s7 = smov 0  }
  0x32   :  { %1795 = vmatprep.mubr.msk.f32.mxu1 %vm95_vm0, %v2283_v8 }
  0x33   :  { %1780 = vmatmul.mubr.msk.f32.gmra.mrb[2].mxu0 %vm95_vm0, %v2298_v12 }
  0x34   :  { %1782 = vmatprep.mubr.msk.f32.mxu0 %vm95_vm0, %v2303_v13 }
  0x35   :  { %1796 = vmatmul.mubr.msk.f32.gmra.mrb[2].mxu1 %vm95_vm0, %v2298_v12 }
  0x36   :  { %1798 = vmatprep.mubr.msk.f32.mxu1 %vm95_vm0, %v2303_v13 }
  0x37   :  { %1783 = vmatmul.mubr.msk.f32.gmra.mrb[4].mxu0 %vm95_vm0, %v2312_v14 }
  0x38   :  { %1785 = vmatprep.mubr.msk.f32.mxu0 %vm95_vm0, %v2317_v15 }
  0x39   :  { %1799 = vmatmul.mubr.msk.f32.gmra.mrb[4].mxu1 %vm95_vm0, %v2312_v14 }
  0x3a   :  { %1801 = vmatprep.mubr.msk.f32.mxu1 %vm95_vm0, %v2317_v15 }
  0x3b   :  { %1786 = vmatmul.mubr.msk.f32.gmra.mrb[6].mxu0 %vm95_vm0, %v2330_v16 }
  0x3c   :  { %1808 = vmatprep.mubr.msk.f32.mxu0 %vm95_vm0, %v348_v17 }
  0x3d   :  { %1802 = vmatmul.mubr.msk.f32.gmra.mrb[6].mxu1 %vm95_vm0, %v2330_v16 }
  0x3f   :  { %1809 = vmatmul.mubr.msk.f32.vlgmr.msra.gmra.mrb[8].mxu0 %vm95_vm0, %v349_v18 }
  0x40   :  { %1811 = vmatprep.mubr.msk.f32.mxu0 %vm95_vm0, %v350_v19 }
  0x43   :  { %1812 = vmatmul.mubr.msk.f32.gmra.mrb[10].mxu0 %vm95_vm0, %v351_v20 }
  0x44   :  { %1814 = vmatprep.mubr.msk.f32.mxu0 %vm95_vm0, %v352_v21 }
  0x47   :  { %1815 = vmatmul.mubr.msk.f32.gmra.mrb[12].mxu0 %vm95_vm0, %v353_v22 }
  0x48   :  { %1817 = vmatprep.mubr.msk.f32.mxu0 %vm95_vm0, %v354_v23 }
  0x4b   :  { %1818 = vmatmul.mubr.msk.f32.gmra.mrb[14].mxu0 %vm95_vm0, %v355_v24 }
  0x4c   :  { %1820 = vmatprep.mubr.msk.f32.mxu0 %vm95_vm0, %v356_v25 }
  0x4f   :  { %1821 = vmatmul.mubr.msk.f32.gmra.mrb[16].mxu0 %vm95_vm0, %v357_v26 }
  0x50   :  { %1823 = vmatprep.mubr.msk.f32.mxu0 %vm95_vm0, %v358_v27 }
  0x53   :  { %1824 = vmatmul.mubr.msk.f32.gmra.mrb[18].mxu0 %vm95_vm0, %v359_v28 }
  0x54   :  { %1826 = vmatprep.mubr.msk.f32.mxu0 %vm95_vm0, %v360_v29 }
  0x57   :  { %1827 = vmatmul.mubr.msk.f32.gmra.mrb[20].mxu0 %vm95_vm0, %v361_v30 }
  0x58   :  { %1829 = vmatprep.mubr.msk.f32.mxu0 %vm95_vm0, %v362_v31 }
  0x5b   :  { %1830 = vmatmul.mubr.msk.f32.gmra.mrb[22].mxu0 %vm95_vm0, %v363_v32 }
 0x102   :  { %v1778_v33 = vpop.f32.mrb[0].mxu0 }
 0x103   :  { %226 = vst [vmem:[#allocation2 + $0x8] sm:$0xff] %v1778_v33  ;;  %v186_v34 = vpop.f32.mrb[1].mxu0 }
 0x104   :  { %225 = vst [vmem:[#allocation2] sm:$0xff] %v186_v34  ;;  %v1794_v37 = vpop.f32.mrb[0].mxu1 }
 0x105   :  { %341 = vst [vmem:[#allocation3 + $0x8] sm:$0xff] %v1794_v37  ;;  %v301_v38 = vpop.f32.mrb[1].mxu1 }
 0x106   :  { %v1781_v35 = vpop.f32.mrb[2].mxu0  ;;  %340 = vst [vmem:[#allocation3] sm:$0xff] %v301_v38 }
 0x107   :  { %228 = vst [vmem:[#allocation2 + $0x18] sm:$0xff] %v1781_v35  ;;  %v196_v36 = vpop.f32.mrb[3].mxu0 }
 0x108   :  { %227 = vst [vmem:[#allocation2 + $0x10] sm:$0xff] %v196_v36  ;;  %v1797_v41 = vpop.f32.mrb[2].mxu1 }
 0x109   :  { %343 = vst [vmem:[#allocation3 + $0x18] sm:$0xff] %v1797_v41  ;;  %v311_v42 = vpop.f32.mrb[3].mxu1 }
 0x10a   :  { %v1784_v39 = vpop.f32.mrb[4].mxu0  ;;  %342 = vst [vmem:[#allocation3 + $0x10] sm:$0xff] %v311_v42 }
 0x10b   :  { %230 = vst [vmem:[#allocation2 + $0x28] sm:$0xff] %v1784_v39  ;;  %v206_v40 = vpop.f32.mrb[5].mxu0 }
 0x10c   :  { %229 = vst [vmem:[#allocation2 + $0x20] sm:$0xff] %v206_v40  ;;  %v1800_v46 = vpop.f32.mrb[4].mxu1 }
 0x10d   :  { %345 = vst [vmem:[#allocation3 + $0x28] sm:$0xff] %v1800_v46  ;;  %v321_v47 = vpop.f32.mrb[5].mxu1 }
 0x10e   :  { %v1787_v43 = vpop.f32.mrb[6].mxu0  ;;  %344 = vst [vmem:[#allocation3 + $0x20] sm:$0xff] %v321_v47 }
 0x10f   :  { %232 = vst [vmem:[#allocation2 + $0x38] sm:$0xff] %v1787_v43  ;;  %v216_v44 = vpop.f32.mrb[7].mxu0 }
 0x110   :  { %231 = vst [vmem:[#allocation2 + $0x30] sm:$0xff] %v216_v44  ;;  %v1803_v52 = vpop.f32.mrb[6].mxu1 }
 0x111   :  { %347 = vst [vmem:[#allocation3 + $0x38] sm:$0xff] %v1803_v52  ;;  %v331_v53 = vpop.f32.mrb[7].mxu1 }
 0x112   :  { %v1810_v48 = vpop.f32.mrb[8].mxu0  ;;  %346 = vst [vmem:[#allocation3 + $0x30] sm:$0xff] %v331_v53 }
 0x113   :  { %v2411_v49 = vadd.f32 %v1810_v48, %v1660_v45  ;;  %v487_v50 = vpop.f32.mrb[9].mxu0 }
 0x114   :  { %v2413_v51 = vadd.f32 %v1660_v45, %v487_v50 }
 0x116   :  { %v1813_v54 = vpop.f32.mrb[10].mxu0 }
 0x117   :  { %v2415_v55 = vadd.f32 %v1813_v54, %v1660_v45  ;;  %v497_v56 = vpop.f32.mrb[11].mxu0 }
 0x118   :  { %v2417_v57 = vadd.f32 %v1660_v45, %v497_v56 }
 0x11a   :  { %v1816_v58 = vpop.f32.mrb[12].mxu0 }
 0x11b   :  { %v2419_v59 = vadd.f32 %v1816_v58, %v1660_v45  ;;  %v507_v60 = vpop.f32.mrb[13].mxu0 }
 0x11c   :  { %v2421_v61 = vadd.f32 %v1660_v45, %v507_v60 }
 0x11e   :  { %v1819_v62 = vpop.f32.mrb[14].mxu0 }
 0x11f   :  { %v2423_v63 = vadd.f32 %v1819_v62, %v1660_v45  ;;  %v517_v0 = vpop.f32.mrb[15].mxu0 }
 0x120   :  { %v2425_v1 = vadd.f32 %v1660_v45, %v517_v0 }
 0x122   :  { %v1822_v3 = vpop.f32.mrb[16].mxu0 }
 0x123   :  { %v2427_v4 = vadd.f32 %v1822_v3, %v1660_v45  ;;  %v527_v5 = vpop.f32.mrb[17].mxu0 }
 0x124   :  { %v2429_v6 = vadd.f32 %v1660_v45, %v527_v5 }
 0x126   :  { %v1825_v9 = vpop.f32.mrb[18].mxu0 }
 0x127   :  { %v2431_v10 = vadd.f32 %v1825_v9, %v1660_v45  ;;  %v537_v11 = vpop.f32.mrb[19].mxu0 }
 0x128   :  { %v2433_v17 = vadd.f32 %v1660_v45, %v537_v11 }
 0x12a   :  { %v1828_v18 = vpop.f32.mrb[20].mxu0 }
 0x12b   :  { %v2435_v19 = vadd.f32 %v1828_v18, %v1660_v45  ;;  %v547_v20 = vpop.f32.mrb[21].mxu0 }
 0x12c   :  { %v2437_v21 = vadd.f32 %v1660_v45, %v547_v20 }
 0x12e   :  { %v1831_v22 = vpop.f32.mrb[22].mxu0 }
 0x12f   :  { %v2439_v23 = vadd.f32 %v1831_v22, %v1660_v45  ;;  %v557_v24 = vpop.f32.mrb[23].mxu0 }
 0x130   :  { %v2441_v25 = vadd.f32 %v1660_v45, %v557_v24 }
 0x131 LB: > { %s572_s1 = sld [smem:[#allocation15 + %s2133_s7]]  ;;  %s579_s22 = scalar_lea.vmem [#allocation5], %s2133_s7  ;;  %s2133_s7 = sphi %s2131_s7, %s571_s7  }
 0x132   : > { %s573_s20 = sld [smem:[#allocation18 + %s2133_s7]]  ;;  %s571_s7 = sadd.s32 1, %s2133_s7  }
 0x133   : > { %p568_p10 = scmp.ge.s32.totalorder %s571_s7, 128  }
 0x134   :  { %v629_v29 = vld [vmem:[%s2811_s8] sm:$0xff] (%p568_p10)  ;;  %v630_v30 = vld [vmem:[%s2811_s8 + $0x8] sm:$0xff] (%p568_p10)  ;;  %1892 = vmatprep.mubr.msk.f32.mxu0 (%p568_p10), %vm95_vm0, %v2263_v2  ;;  %v631_v34 = vld [vmem:[%s2811_s8 + $0x10] sm:$0xff] (%p568_p10)  ;;  %vm959_vm1 = vcmask (%p568_p10), 7168  }
 0x135   :  { %v813_v31 = vld [vmem:[%s2813_s10] sm:$0xff] (%p568_p10)  ;;  %v1916_v32 = vpack.c.bf16 (%p568_p10), %v630_v30, %v629_v29  ;;  %v814_v33 = vld [vmem:[%s2813_s10 + $0x8] sm:$0xff] (%p568_p10)  ;;  %v632_v35 = vld [vmem:[%s2811_s8 + $0x18] sm:$0xff] (%p568_p10) }
 0x136   :  { %570 = sbr.rel (!%p568_p10) target bundleno = 305 (0x131), region = 140  ;;  %v1948_v36 = vpack.c.bf16 (%p568_p10), %v814_v33, %v813_v31  ;;  %v1920_v37 = vpack.c.bf16 (%p568_p10), %v632_v35, %v631_v34  ;;  %v633_v38 = vld [vmem:[%s2811_s8 + $0x20] sm:$0xff] (%p568_p10)  ;;  %v634_v2 = vld [vmem:[%s2811_s8 + $0x28] sm:$0xff] (%p568_p10)  ;;  %v635_v40 = vld [vmem:[%s2811_s8 + $0x30] sm:$0xff] (%p568_p10) }
 0x137   : > { %s574_s4 = scalar_lea.vmem [#allocation2], %s572_s1  ;;  %1917 = vmatprep.subr.bf16.mxu1 (%p568_p10), %v1916_v32  ;;  %v1924_v39 = vpack.c.bf16 (%p568_p10), %v634_v2, %v633_v38  ;;  %v636_v41 = vld [vmem:[%s2811_s8 + $0x38] sm:$0xff] (%p568_p10)  ;;  %v637_v46 = vld [vmem:[%s2811_s8 + $0x40] sm:$0xff] (%p568_p10)  ;;  %v638_v47 = vld [vmem:[%s2811_s8 + $0x48] sm:$0xff] (%p568_p10) }
 0x138   : > { %v575_v26 = vld [vmem:[%s574_s4] sm:$0x1]  ;;  %s576_s21 = scalar_lea.vmem [#allocation3], %s573_s20  ;;  %1949 = vmatprep.subr.bf16.mxu0 (%p568_p10), %v1948_v36  ;;  %1919 = vmatpush3.bf16.msra.mxu1 (%p568_p10), %v1916_v32  ;;  %v1928_v44 = vpack.c.bf16 (%p568_p10), %v636_v41, %v635_v40  ;;  %v640_v48 = vld [vmem:[%s2811_s8 + $0x58] sm:$0xff] (%p568_p10)  ;;  %v642_v50 = vld [vmem:[%s2811_s8 + $0x68] sm:$0xff] (%p568_p10) }
 0x139   : > { %v577_v27 = vld [vmem:[%s576_s21] sm:$0x1]  ;;  %1951 = vmatpush3.bf16.msra.mxu0 (%p568_p10), %v1948_v36  ;;  %1921 = vmatprep.subr.bf16.mxu1 (%p568_p10), %v1920_v37 }
 0x13a   : > { %v578_v28 = vadd.f32 %v577_v27, %v575_v26 }
 0x13c   : > { %580 = vst [vmem:[%s579_s22] sm:$0x1] %v578_v28  ;;  %1893 = vmatmul.mubr.msk.f32.vlgmr.msra.gmra.mrb[24].mxu0 (%p568_p10), %vm95_vm0, %v2278_v7  ;;  %1923 = vmatpush3.bf16.msra.mxu1 (%p568_p10), %v1920_v37  ;;  %v1932_v7 = vpack.c.bf16 (%p568_p10), %v638_v47, %v637_v46 }
 0x13d   :  { %1895 = vmatprep.mubr.msk.f32.mxu0 %vm95_vm0, %v2283_v8  ;;  %1925 = vmatprep.subr.bf16.mxu1 %v1924_v39  ;;  %v639_v8 = vld [vmem:[%s2811_s8 + $0x50] sm:$0xff] }
 0x140   :  { %1896 = vmatmul.mubr.msk.f32.gmra.mrb[26].mxu0 %vm95_vm0, %v2298_v12  ;;  %1927 = vmatpush3.bf16.msra.mxu1 %v1924_v39  ;;  %v1936_v12 = vpack.c.bf16 %v640_v48, %v639_v8 }
 0x141   :  { %1929 = vmatprep.subr.bf16.mxu1 %v1928_v44  ;;  %1898 = vmatprep.mubr.msk.f32.mxu0 %vm95_vm0, %v2303_v13  ;;  %v641_v13 = vld [vmem:[%s2811_s8 + $0x60] sm:$0xff] }
 0x143   :  { %v581_v42 = vld [vmem:[#allocation5] sm:$0xff]  ;;  %v582_v52 = vld [vmem:[#allocation5 + $0x8] sm:$0xff]  ;;  %v583_v54 = vld [vmem:[#allocation5 + $0x10] sm:$0xff] }
 0x144   :  { %v597_v43 = vadd.f32 %v581_v42, %v2413_v51  ;;  %1931 = vmatpush3.bf16.msra.mxu1 %v1928_v44  ;;  %1899 = vmatmul.mubr.msk.f32.gmra.mrb[28].mxu0 %vm95_vm0, %v2312_v14  ;;  %v1940_v51 = vpack.c.bf16 %v642_v50, %v641_v13  ;;  %v643_v14 = vld [vmem:[%s2811_s8 + $0x70] sm:$0xff]  ;;  %v598_v56 = vadd.f32 %v582_v52, %v2411_v49  ;;  %v584_v58 = vld [vmem:[#allocation5 + $0x18] sm:$0xff]  ;;  %v585_v60 = vld [vmem:[#allocation5 + $0x20] sm:$0xff] }
 0x145   :  { %1933 = vmatprep.subr.bf16.mxu1 %v1932_v7  ;;  %1901 = vmatprep.mubr.msk.f32.mxu0 %vm95_vm0, %v2317_v15  ;;  %v644_v15 = vld [vmem:[%s2811_s8 + $0x78] sm:$0xff]  ;;  %v600_v0 = vadd.f32 %v584_v58, %v2415_v55  ;;  %v601_v5 = vadd.f32 %v585_v60, %v2421_v61  ;;  %v586_v9 = vld [vmem:[#allocation5 + $0x28] sm:$0xff]  ;;  %v587_v11 = vld [vmem:[#allocation5 + $0x30] sm:$0xff] }
 0x146   :  { %v613_v45 = vmax.f32 %v597_v43, 0.0  ;;  %v1944_v53 = vpack.c.bf16 %v644_v15, %v643_v14  ;;  %v614_v62 = vmax.f32 %v598_v56, 0.0  ;;  %v602_v20 = vadd.f32 %v586_v9, %v2419_v59  ;;  %v588_v22 = vld [vmem:[#allocation5 + $0x38] sm:$0xff]  ;;  %v589_v24 = vld [vmem:[#allocation5 + $0x40] sm:$0xff]  ;;  %v590_v28 = vld [vmem:[#allocation5 + $0x48] sm:$0xff] }
 0x147   :  { %v616_v18 = vmax.f32 %v600_v0, 0.0  ;;  %v617_v49 = vmax.f32 %v601_v5, 0.0  ;;  %v604_v55 = vadd.f32 %v588_v22, %v2423_v63  ;;  %v605_v61 = vadd.f32 %v589_v24, %v2429_v6  ;;  %v591_v29 = vld [vmem:[#allocation5 + $0x50] sm:$0xff]  ;;  %v592_v32 = vld [vmem:[#allocation5 + $0x58] sm:$0xff]  ;;  %v593_v33 = vld [vmem:[#allocation5 + $0x60] sm:$0xff] }
 0x148   :  { %1864 = vmatprep.mubr.f32.mxu1 %v613_v45  ;;  %1935 = vmatpush3.bf16.msra.mxu1 %v1932_v7  ;;  %v618_v26 = vmax.f32 %v602_v20, 0.0  ;;  %v606_v59 = vadd.f32 %v590_v28, %v2427_v4  ;;  %v608_v63 = vadd.f32 %v592_v32, %v2431_v10  ;;  %v609_v6 = vadd.f32 %v593_v33, %v2437_v21  ;;  %v594_v36 = vld [vmem:[#allocation5 + $0x68] sm:$0xff]  ;;  %v595_v37 = vld [vmem:[#allocation5 + $0x70] sm:$0xff]  ;;  %v596_v39 = vld [vmem:[#allocation5 + $0x78] sm:$0xff] }
 0x149   :  { %1902 = vmatmul.mubr.msk.f32.gmra.mrb[30].mxu0 %vm95_vm0, %v2330_v16  ;;  %1937 = vmatprep.subr.bf16.mxu1 %v1936_v12  ;;  %v599_v16 = vadd.f32 %v583_v54, %v2417_v57  ;;  %v603_v57 = vadd.f32 %v587_v11, %v2425_v1  ;;  %v620_v30 = vmax.f32 %v604_v55, 0.0  ;;  %v621_v31 = vmax.f32 %v605_v61, 0.0  ;;  %v1687_v21 = vld [vmem:[%s2815_s12] ss:$0 sm:$0xff] }
 0x14a   :  { %v607_v1 = vadd.f32 %v591_v29, %v2433_v17  ;;  %v622_v34 = vmax.f32 %v606_v59, 0.0  ;;  %v624_v38 = vmax.f32 %v608_v63, 0.0  ;;  %v610_v4 = vadd.f32 %v594_v36, %v2435_v19  ;;  %v1686_v19 = vld [vmem:[%s2814_s11] ss:$0 sm:$0xff] }
 0x14b   :  { %v615_v3 = vmax.f32 %v599_v16, 0.0  ;;  %v619_v27 = vmax.f32 %v603_v57, 0.0  ;;  %v625_v2 = vmax.f32 %v609_v6, 0.0  ;;  %v611_v17 = vadd.f32 %v595_v37, %v2441_v25  ;;  %v2576_v60 = vld [vmem:[%s2812_s9] ss:$0 sm:$0xff]  ;;  %s2673_s9 = smov 0  }
 0x14c   :  { %1939 = vmatpush3.bf16.msra.mxu1 %v1936_v12  ;;  %v623_v35 = vmax.f32 %v607_v1, 0.0  ;;  %v626_v40 = vmax.f32 %v610_v4, 0.0  ;;  %v612_v41 = vadd.f32 %v596_v39, %v2439_v23  ;;  %v2582_v5 = vld [vmem:[%s2816_s13] ss:$0 sm:$0xff] }
 0x14d   :  { %1941 = vmatprep.subr.bf16.mxu1 %v1940_v51  ;;  %v627_v10 = vmax.f32 %v611_v17, 0.0 }
 0x14e   :  { %v628_v42 = vmax.f32 %v612_v41, 0.0 }
 0x150   :  { %1943 = vmatpush3.bf16.msra.mxu1 %v1940_v51 }
 0x151   :  { %1945 = vmatprep.subr.bf16.mxu1 %v1944_v53 }
 0x154   :  { %1947 = vmatpush3.bf16.msra.mxu1 %v1944_v53 }
 0x157   :  { %1865 = vmatmul.mubr.f32.vlgmr.msra.gmra.mrb[8].mxu1 %v614_v62 }
 0x158   :  { %1867 = vmatprep.mubr.f32.mxu1 %v615_v3 }
 0x15b   :  { %1868 = vmatmul.mubr.f32.gmra.mrb[10].mxu1 %v616_v18 }
 0x15c   :  { %1870 = vmatprep.mubr.f32.mxu1 %v617_v49 }
 0x15f   :  { %1871 = vmatmul.mubr.f32.gmra.mrb[12].mxu1 %v618_v26 }
 0x160   :  { %1873 = vmatprep.mubr.f32.mxu1 %v619_v27 }
 0x163   :  { %1874 = vmatmul.mubr.f32.gmra.mrb[14].mxu1 %v620_v30 }
 0x164   :  { %1876 = vmatprep.mubr.f32.mxu1 %v621_v31 }
 0x167   :  { %1877 = vmatmul.mubr.f32.gmra.mrb[16].mxu1 %v622_v34 }
 0x168   :  { %1879 = vmatprep.mubr.f32.mxu1 %v623_v35 }
 0x16b   :  { %1880 = vmatmul.mubr.f32.gmra.mrb[18].mxu1 %v624_v38 }
 0x16c   :  { %1882 = vmatprep.mubr.f32.mxu1 %v625_v2 }
 0x16f   :  { %1883 = vmatmul.mubr.f32.gmra.mrb[20].mxu1 %v626_v40 }
 0x170   :  { %1885 = vmatprep.mubr.f32.mxu1 %v627_v10 }
 0x173   :  { %1886 = vmatmul.mubr.f32.gmra.mrb[22].mxu1 %v628_v42 }
 0x20f   :  { %v2535_v25 = vpop.f32.mrb[24].mxu0 }
 0x210   :  { %921 = vst [vmem:[#allocation4 + $0x8] sm:$0xff] %v2535_v25  ;;  %v2538_v43 = vpop.f32.mrb[25].mxu0  ;;  %v976_v23 = vmul.f32 %v2535_v25, %v1687_v21  ;;  %v936_v44 = vmul.f32 %v2535_v25, %v1686_v19 }
 0x211   :  { %920 = vst [vmem:[#allocation4] sm:$0xff] %v2538_v43  ;;  %v935_v47 = vmul.f32 %v1686_v19, %v2538_v43  ;;  %v975_v48 = vmul.f32 %v1687_v21, %v2538_v43 }
 0x212   :  { %985 = vadd.xlane.f32.xlu1 %v976_v23  ;;  %945 = vadd.xlane.f32.xlu0 %v936_v44 }
 0x213   :  { %v2543_v45 = vpop.f32.mrb[26].mxu0 }
 0x214   :  { %923 = vst [vmem:[#allocation4 + $0x18] sm:$0xff] %v2543_v45  ;;  %v2546_v46 = vpop.f32.mrb[27].mxu0  ;;  %v938_v7 = vmul.f32 %v2543_v45, %v1686_v19  ;;  %v978_v12 = vmul.f32 %v2543_v45, %v1687_v21 }
 0x215   :  { %922 = vst [vmem:[#allocation4 + $0x10] sm:$0xff] %v2546_v46  ;;  %v977_v51 = vmul.f32 %v1687_v21, %v2546_v46  ;;  %v937_v14 = vmul.f32 %v1686_v19, %v2546_v46 }
 0x216   :  { %943 = vadd.xlane.f32.xlu0 %v935_v47  ;;  %949 = vadd.xlane.f32.xlu1 %v938_v7 }
 0x217   :  { %v2551_v8 = vpop.f32.mrb[28].mxu0 }
 0x218   :  { %925 = vst [vmem:[#allocation4 + $0x28] sm:$0xff] %v2551_v8  ;;  %v2556_v13 = vpop.f32.mrb[29].mxu0  ;;  %v940_v52 = vmul.f32 %v2551_v8, %v1686_v19  ;;  %v980_v54 = vmul.f32 %v2551_v8, %v1687_v21 }
 0x219   :  { %924 = vst [vmem:[#allocation4 + $0x20] sm:$0xff] %v2556_v13  ;;  %v939_v53 = vmul.f32 %v1686_v19, %v2556_v13  ;;  %v979_v56 = vmul.f32 %v1687_v21, %v2556_v13 }
 0x21a   :  { %983 = vadd.xlane.f32.xlu0 %v975_v48  ;;  %989 = vadd.xlane.f32.xlu1 %v978_v12 }
 0x21c   :  { %v2559_v50 = vpop.f32.mrb[30].mxu0 }
 0x21d   :  { %927 = vst [vmem:[#allocation4 + $0x38] sm:$0xff] %v2559_v50  ;;  %v2564_v15 = vpop.f32.mrb[31].mxu0  ;;  %v942_v16 = vmul.f32 %v2559_v50, %v1686_v19  ;;  %v982_v11 = vmul.f32 %v2559_v50, %v1687_v21 }
 0x21e   :  { %926 = vst [vmem:[#allocation4 + $0x30] sm:$0xff] %v2564_v15  ;;  %987 = vadd.xlane.f32.xlu0 %v977_v51  ;;  %947 = vadd.xlane.f32.xlu1 %v937_v14  ;;  %v941_v58 = vmul.f32 %v1686_v19, %v2564_v15  ;;  %v981_v18 = vmul.f32 %v1687_v21, %v2564_v15 }
 0x222   :  { %953 = vadd.xlane.f32.xlu1 %v940_v52  ;;  %951 = vadd.xlane.f32.xlu0 %v939_v53 }
 0x226   :  { %993 = vadd.xlane.f32.xlu1 %v980_v54  ;;  %991 = vadd.xlane.f32.xlu0 %v979_v56  ;;  %v2145_v54 = vmov 0.0   ;;  %v2146_v56 = vmov -1e+30  }
 0x227   :  { %1078 = vst.msk [vmem:[#allocation10] sm:$0xff] %vm959_vm1, %v2145_v54  ;;  %1079 = vst.msk [vmem:[#allocation10 + $0x8] sm:$0xff] %vm959_vm1, %v2145_v54 }
 0x228   :  { %1080 = vst.msk [vmem:[#allocation10 + $0x10] sm:$0xff] %vm959_vm1, %v2145_v54  ;;  %1081 = vst.msk [vmem:[#allocation10 + $0x18] sm:$0xff] %vm959_vm1, %v2145_v54 }
 0x229   :  { %1082 = vst.msk [vmem:[#allocation10 + $0x20] sm:$0xff] %vm959_vm1, %v2145_v54  ;;  %1083 = vst.msk [vmem:[#allocation10 + $0x28] sm:$0xff] %vm959_vm1, %v2145_v54 }
 0x22a   :  { %957 = vadd.xlane.f32.xlu1 %v942_v16  ;;  %955 = vadd.xlane.f32.xlu0 %v941_v58  ;;  %v1866_v62 = vpop.f32.mrb[8].mxu1  ;;  %1084 = vst.msk [vmem:[#allocation10 + $0x30] sm:$0xff] %vm959_vm1, %v2145_v54  ;;  %1085 = vst.msk [vmem:[#allocation10 + $0x38] sm:$0xff] %vm959_vm1, %v2145_v54 }
 0x22b   :  { %v724_v0 = vadd.f32 %v1866_v62, %v2576_v60  ;;  %v718_v3 = vpop.f32.mrb[9].mxu1  ;;  %1086 = vst.msk [vmem:[#allocation11] sm:$0xff] %vm959_vm1, %v2145_v54  ;;  %1087 = vst.msk [vmem:[#allocation11 + $0x8] sm:$0xff] %vm959_vm1, %v2145_v54 }
 0x22c   :  { %v719_v9 = vadd.f32 %v2576_v60, %v718_v3  ;;  %1088 = vst.msk [vmem:[#allocation11 + $0x10] sm:$0xff] %vm959_vm1, %v2145_v54  ;;  %1089 = vst.msk [vmem:[#allocation11 + $0x18] sm:$0xff] %vm959_vm1, %v2145_v54 }
 0x22d   :  { %798 = vst [vmem:[#allocation20 + $0x8] sm:$0xff] %v724_v0  ;;  %v1015_v49 = vmul.f32 %v2582_v5, %v724_v0  ;;  %1090 = vst.msk [vmem:[#allocation11 + $0x20] sm:$0xff] %vm959_vm1, %v2145_v54 }
 0x22e   :  { %797 = vst [vmem:[#allocation20] sm:$0xff] %v719_v9  ;;  %997 = vadd.xlane.f32.xlu1 %v982_v11  ;;  %995 = vadd.xlane.f32.xlu0 %v981_v18  ;;  %v1869_v20 = vpop.f32.mrb[10].mxu1  ;;  %v1014_v57 = vmul.f32 %v2582_v5, %v719_v9  ;;  %1091 = vst.msk [vmem:[#allocation11 + $0x28] sm:$0xff] %vm959_vm1, %v2145_v54 }
 0x22f   :  { %v734_v22 = vadd.f32 %v1869_v20, %v2576_v60  ;;  %v728_v24 = vpop.f32.mrb[11].mxu1  ;;  %1092 = vst.msk [vmem:[#allocation11 + $0x30] sm:$0xff] %vm959_vm1, %v2145_v54  ;;  %1093 = vst.msk [vmem:[#allocation11 + $0x38] sm:$0xff] %vm959_vm1, %v2145_v54 }
 0x230   :  { %v729_v26 = vadd.f32 %v2576_v60, %v728_v24  ;;  %1094 = vst.msk [vmem:[#allocation12] sm:$0xff] %vm959_vm1, %v2146_v56  ;;  %1095 = vst.msk [vmem:[#allocation12 + $0x8] sm:$0xff] %vm959_vm1, %v2146_v56 }
 0x231   :  { %800 = vst [vmem:[#allocation20 + $0x18] sm:$0xff] %v734_v22  ;;  %v1017_v27 = vmul.f32 %v2582_v5, %v734_v22  ;;  %1096 = vst.msk [vmem:[#allocation12 + $0x10] sm:$0xff] %vm959_vm1, %v2146_v56 }
 0x232   :  { %799 = vst [vmem:[#allocation20 + $0x10] sm:$0xff] %v729_v26  ;;  %1032 = vadd.xlane.f32.xlu1 %v1015_v49  ;;  %1030 = vadd.xlane.f32.xlu0 %v1014_v57  ;;  %v1872_v55 = vpop.f32.mrb[12].mxu1  ;;  %v1016_v61 = vmul.f32 %v2582_v5, %v729_v26  ;;  %1097 = vst.msk [vmem:[#allocation12 + $0x18] sm:$0xff] %vm959_vm1, %v2146_v56 }
 0x233   :  { %v744_v28 = vadd.f32 %v1872_v55, %v2576_v60  ;;  %v738_v29 = vpop.f32.mrb[13].mxu1  ;;  %1098 = vst.msk [vmem:[#allocation12 + $0x20] sm:$0xff] %vm959_vm1, %v2146_v56  ;;  %1099 = vst.msk [vmem:[#allocation12 + $0x28] sm:$0xff] %vm959_vm1, %v2146_v56 }
 0x234   :  { %v739_v30 = vadd.f32 %v2576_v60, %v738_v29  ;;  %1100 = vst.msk [vmem:[#allocation12 + $0x30] sm:$0xff] %vm959_vm1, %v2146_v56  ;;  %1101 = vst.msk [vmem:[#allocation12 + $0x38] sm:$0xff] %vm959_vm1, %v2146_v56 }
 0x235   :  { %802 = vst [vmem:[#allocation20 + $0x28] sm:$0xff] %v744_v28  ;;  %v1019_v31 = vmul.f32 %v2582_v5, %v744_v28 }
 0x236   :  { %801 = vst [vmem:[#allocation20 + $0x20] sm:$0xff] %v739_v30  ;;  %1036 = vadd.xlane.f32.xlu1 %v1017_v27  ;;  %1034 = vadd.xlane.f32.xlu0 %v1016_v61  ;;  %v1875_v59 = vpop.f32.mrb[14].mxu1  ;;  %v1018_v1 = vmul.f32 %v2582_v5, %v739_v30 }
 0x237   :  { %v754_v32 = vadd.f32 %v1875_v59, %v2576_v60  ;;  %v748_v33 = vpop.f32.mrb[15].mxu1 }
 0x238   :  { %v749_v34 = vadd.f32 %v2576_v60, %v748_v33 }
 0x239   :  { %804 = vst [vmem:[#allocation20 + $0x38] sm:$0xff] %v754_v32  ;;  %v1021_v35 = vmul.f32 %v2582_v5, %v754_v32 }
 0x23a   :  { %803 = vst [vmem:[#allocation20 + $0x30] sm:$0xff] %v749_v34  ;;  %1040 = vadd.xlane.f32.xlu1 %v1019_v31  ;;  %1038 = vadd.xlane.f32.xlu0 %v1018_v1  ;;  %v1878_v63 = vpop.f32.mrb[16].mxu1  ;;  %v1020_v6 = vmul.f32 %v2582_v5, %v749_v34 }
 0x23b   :  { %v764_v36 = vadd.f32 %v1878_v63, %v2576_v60  ;;  %v758_v37 = vpop.f32.mrb[17].mxu1 }
 0x23c   :  { %v759_v38 = vadd.f32 %v2576_v60, %v758_v37 }
 0x23d   :  { %806 = vst [vmem:[#allocation20 + $0x48] sm:$0xff] %v764_v36  ;;  %v1023_v2 = vmul.f32 %v2582_v5, %v764_v36 }
 0x23e   :  { %805 = vst [vmem:[#allocation20 + $0x40] sm:$0xff] %v759_v38  ;;  %1044 = vadd.xlane.f32.xlu1 %v1021_v35  ;;  %1042 = vadd.xlane.f32.xlu0 %v1020_v6  ;;  %v1881_v4 = vpop.f32.mrb[18].mxu1  ;;  %v1022_v17 = vmul.f32 %v2582_v5, %v759_v38 }
 0x23f   :  { %v774_v39 = vadd.f32 %v1881_v4, %v2576_v60  ;;  %v768_v40 = vpop.f32.mrb[19].mxu1 }
 0x240   :  { %v769_v41 = vadd.f32 %v2576_v60, %v768_v40 }
 0x241   :  { %808 = vst [vmem:[#allocation20 + $0x58] sm:$0xff] %v774_v39  ;;  %v1025_v42 = vmul.f32 %v2582_v5, %v774_v39 }
 0x242   :  { %807 = vst [vmem:[#allocation20 + $0x50] sm:$0xff] %v769_v41  ;;  %1048 = vadd.xlane.f32.xlu1 %v1023_v2  ;;  %1046 = vadd.xlane.f32.xlu0 %v1022_v17  ;;  %v1884_v10 = vpop.f32.mrb[20].mxu1  ;;  %v1024_v21 = vmul.f32 %v2582_v5, %v769_v41 }
 0x243   :  { %v784_v19 = vadd.f32 %v1884_v10, %v2576_v60  ;;  %v778_v23 = vpop.f32.mrb[21].mxu1 }
 0x244   :  { %v779_v44 = vadd.f32 %v2576_v60, %v778_v23 }
 0x245   :  { %810 = vst [vmem:[#allocation20 + $0x68] sm:$0xff] %v784_v19  ;;  %v1027_v7 = vmul.f32 %v2582_v5, %v784_v19 }
 0x246   :  { %809 = vst [vmem:[#allocation20 + $0x60] sm:$0xff] %v779_v44  ;;  %1052 = vadd.xlane.f32.xlu1 %v1025_v42  ;;  %1050 = vadd.xlane.f32.xlu0 %v1024_v21  ;;  %v1887_v47 = vpop.f32.mrb[22].mxu1  ;;  %v1026_v48 = vmul.f32 %v2582_v5, %v779_v44 }
 0x247   :  { %v794_v12 = vadd.f32 %v1887_v47, %v2576_v60  ;;  %v788_v51 = vpop.f32.mrb[23].mxu1 }
 0x248   :  { %v789_v14 = vadd.f32 %v2576_v60, %v788_v51 }
 0x249   :  { %812 = vst [vmem:[#allocation20 + $0x78] sm:$0xff] %v794_v12  ;;  %v1029_v52 = vmul.f32 %v2582_v5, %v794_v12 }
 0x24a   :  { %811 = vst [vmem:[#allocation20 + $0x70] sm:$0xff] %v789_v14  ;;  %1056 = vadd.xlane.f32.xlu1 %v1027_v7  ;;  %1054 = vadd.xlane.f32.xlu0 %v1026_v48  ;;  %v1028_v53 = vmul.f32 %v2582_v5, %v789_v14 }
 0x24e   :  { %1060 = vadd.xlane.f32.xlu1 %v1029_v52  ;;  %1058 = vadd.xlane.f32.xlu0 %v1028_v53 }
 0x29f   :  { %v986_v16 = vpop.xlane.xlu1 %985  ;;  %v946_v58 = vpop.xlane.xlu0 %945 }
 0x2a0   :  { %1000 = vst.msk [vmem:[#allocation8 + $0x8] sm:$0xff] %vm959_vm1, %v986_v16  ;;  %961 = vst.msk [vmem:[#allocation7 + $0x8] sm:$0xff] %vm959_vm1, %v946_v58 }
 0x2a3   :  { %v944_v60 = vpop.xlane.xlu0 %943  ;;  %v950_v62 = vpop.xlane.xlu1 %949 }
 0x2a4   :  { %960 = vst.msk [vmem:[#allocation7] sm:$0xff] %vm959_vm1, %v944_v60  ;;  %963 = vst.msk [vmem:[#allocation7 + $0x18] sm:$0xff] %vm959_vm1, %v950_v62 }
 0x2a7   :  { %v984_v0 = vpop.xlane.xlu0 %983  ;;  %v990_v3 = vpop.xlane.xlu1 %989 }
 0x2a8   :  { %999 = vst.msk [vmem:[#allocation8] sm:$0xff] %vm959_vm1, %v984_v0  ;;  %1002 = vst.msk [vmem:[#allocation8 + $0x18] sm:$0xff] %vm959_vm1, %v990_v3 }
 0x2ab   :  { %v988_v5 = vpop.xlane.xlu0 %987  ;;  %v948_v9 = vpop.xlane.xlu1 %947 }
 0x2ac   :  { %1001 = vst.msk [vmem:[#allocation8 + $0x10] sm:$0xff] %vm959_vm1, %v988_v5  ;;  %962 = vst.msk [vmem:[#allocation7 + $0x10] sm:$0xff] %vm959_vm1, %v948_v9 }
 0x2af   :  { %v954_v11 = vpop.xlane.xlu1 %953  ;;  %v952_v18 = vpop.xlane.xlu0 %951 }
 0x2b0   :  { %965 = vst.msk [vmem:[#allocation7 + $0x28] sm:$0xff] %vm959_vm1, %v954_v11  ;;  %964 = vst.msk [vmem:[#allocation7 + $0x20] sm:$0xff] %vm959_vm1, %v952_v18 }
 0x2b3   :  { %v994_v20 = vpop.xlane.xlu1 %993  ;;  %v992_v49 = vpop.xlane.xlu0 %991 }
 0x2b4   :  { %1004 = vst.msk [vmem:[#allocation8 + $0x28] sm:$0xff] %vm959_vm1, %v994_v20  ;;  %1003 = vst.msk [vmem:[#allocation8 + $0x20] sm:$0xff] %vm959_vm1, %v992_v49 }
 0x2b7   :  { %v958_v57 = vpop.xlane.xlu1 %957  ;;  %v956_v22 = vpop.xlane.xlu0 %955 }
 0x2b8   :  { %967 = vst.msk [vmem:[#allocation7 + $0x38] sm:$0xff] %vm959_vm1, %v958_v57  ;;  %966 = vst.msk [vmem:[#allocation7 + $0x30] sm:$0xff] %vm959_vm1, %v956_v22 }
 0x2bb   :  { %v998_v24 = vpop.xlane.xlu1 %997  ;;  %v996_v26 = vpop.xlane.xlu0 %995 }
 0x2bc   :  { %1006 = vst.msk [vmem:[#allocation8 + $0x38] sm:$0xff] %vm959_vm1, %v998_v24  ;;  %1005 = vst.msk [vmem:[#allocation8 + $0x30] sm:$0xff] %vm959_vm1, %v996_v26 }
 0x2bf   :  { %v1033_v55 = vpop.xlane.xlu1 %1032  ;;  %v1031_v27 = vpop.xlane.xlu0 %1030 }
 0x2c0   :  { %1063 = vst.msk [vmem:[#allocation6 + $0x8] sm:$0xff] %vm959_vm1, %v1033_v55  ;;  %1062 = vst.msk [vmem:[#allocation6] sm:$0xff] %vm959_vm1, %v1031_v27 }
 0x2c3   :  { %v1037_v61 = vpop.xlane.xlu1 %1036  ;;  %v1035_v28 = vpop.xlane.xlu0 %1034 }
 0x2c4   :  { %1065 = vst.msk [vmem:[#allocation6 + $0x18] sm:$0xff] %vm959_vm1, %v1037_v61  ;;  %1064 = vst.msk [vmem:[#allocation6 + $0x10] sm:$0xff] %vm959_vm1, %v1035_v28 }
 0x2c7   :  { %v1041_v29 = vpop.xlane.xlu1 %1040  ;;  %v1039_v30 = vpop.xlane.xlu0 %1038 }
 0x2c8   :  { %1067 = vst.msk [vmem:[#allocation6 + $0x28] sm:$0xff] %vm959_vm1, %v1041_v29  ;;  %1066 = vst.msk [vmem:[#allocation6 + $0x20] sm:$0xff] %vm959_vm1, %v1039_v30 }
 0x2cb   :  { %v1045_v59 = vpop.xlane.xlu1 %1044  ;;  %v1043_v31 = vpop.xlane.xlu0 %1042 }
 0x2cc   :  { %1069 = vst.msk [vmem:[#allocation6 + $0x38] sm:$0xff] %vm959_vm1, %v1045_v59  ;;  %1068 = vst.msk [vmem:[#allocation6 + $0x30] sm:$0xff] %vm959_vm1, %v1043_v31 }
 0x2cf   :  { %v1049_v1 = vpop.xlane.xlu1 %1048  ;;  %v1047_v32 = vpop.xlane.xlu0 %1046 }
 0x2d0   :  { %1071 = vst.msk [vmem:[#allocation6 + $0x48] sm:$0xff] %vm959_vm1, %v1049_v1  ;;  %1070 = vst.msk [vmem:[#allocation6 + $0x40] sm:$0xff] %vm959_vm1, %v1047_v32 }
 0x2d3   :  { %v1053_v33 = vpop.xlane.xlu1 %1052  ;;  %v1051_v34 = vpop.xlane.xlu0 %1050 }
 0x2d4   :  { %1073 = vst.msk [vmem:[#allocation6 + $0x58] sm:$0xff] %vm959_vm1, %v1053_v33  ;;  %1072 = vst.msk [vmem:[#allocation6 + $0x50] sm:$0xff] %vm959_vm1, %v1051_v34 }
 0x2d7   :  { %v1057_v63 = vpop.xlane.xlu1 %1056  ;;  %v1055_v35 = vpop.xlane.xlu0 %1054 }
 0x2d8   :  { %1075 = vst.msk [vmem:[#allocation6 + $0x68] sm:$0xff] %vm959_vm1, %v1057_v63  ;;  %1074 = vst.msk [vmem:[#allocation6 + $0x60] sm:$0xff] %vm959_vm1, %v1055_v35 }
 0x2db   :  { %v1061_v6 = vpop.xlane.xlu1 %1060  ;;  %v1059_v36 = vpop.xlane.xlu0 %1058 }
 0x2dc   :  { %1077 = vst.msk [vmem:[#allocation6 + $0x78] sm:$0xff] %vm959_vm1, %v1061_v6  ;;  %1076 = vst.msk [vmem:[#allocation6 + $0x70] sm:$0xff] %vm959_vm1, %v1059_v36 }
 0x2dd LB: > { %s1108_s13 = sld [smem:[#allocation15 + %s2137_s9]]  ;;  %s1110_s2 = scalar_lea.vmem [#allocation6], %s2137_s9  ;;  %vm1122_vm2 = vcmask 0   ;;  %s2137_s9 = sphi %s2673_s9, %s1107_s9  }
 0x2de   : > { %s1109_s22 = sld [smem:[#allocation18 + %s2137_s9]]  ;;  %s1121_s26 = scalar_lea.vmem [#allocation9], %s2137_s9 }
 0x2df   : > { %s1107_s9 = sadd.s32 1, %s2137_s9  }
 0x2e0   : > { %p1104_p11 = scmp.ge.s32.totalorder %s1107_s9, 128  }
 0x2e1   :  { %v2147_v47 = vmov (%p1104_p11), 0   ;;  %v1194_v60 = vld [vmem:[#allocation7 + $0x10] sm:$0xff] (%p1104_p11)  ;;  %v1192_v9 = vld [vmem:[#allocation7] sm:$0xff] (%p1104_p11)  ;;  %v1195_v49 = vld [vmem:[#allocation7 + $0x18] sm:$0xff] (%p1104_p11)  ;;  %s2756_s27 = smov (%p1104_p11), 0  }
 0x2e2   :  { %1987 = vset.pattern.permute.xlu1 (%p1104_p11), %v2147_v47  ;;  %1986 = vset.pattern.permute.xlu0 (%p1104_p11), %v2147_v47  ;;  %v1202_v0 = vld [vmem:[#allocation8 + $0x10] sm:$0xff] (%p1104_p11)  ;;  %v1200_v11 = vld [vmem:[#allocation8] sm:$0xff] (%p1104_p11)  ;;  %v1203_v57 = vld [vmem:[#allocation8 + $0x18] sm:$0xff] (%p1104_p11) }
 0x2e3   : > { %v1111_v37 = vld [vmem:[%s1110_s2] sm:$0x1]  ;;  %s1112_s23 = scalar_lea.vmem [#allocation7], %s1108_s13  ;;  %v1193_v22 = vld [vmem:[#allocation7 + $0x8] sm:$0xff] (%p1104_p11)  ;;  %v1210_v26 = vadd.f32 (%p1104_p11), %v1202_v0, %v1194_v60  ;;  %v1208_v59 = vadd.f32 (%p1104_p11), %v1200_v11, %v1192_v9  ;;  %v1211_v32 = vadd.f32 (%p1104_p11), %v1203_v57, %v1195_v49 }
 0x2e4   : > { %v1113_v38 = vld [vmem:[%s1112_s23] sm:$0x1]  ;;  %s1114_s30 = scalar_lea.vmem [#allocation8], %s1109_s22  ;;  %s1124_s24 = scalar_lea.vmem [#allocation10], %s1109_s22  ;;  %v1201_v55 = vld [vmem:[#allocation8 + $0x8] sm:$0xff] (%p1104_p11) }
 0x2e5   : > { %v1115_v4 = vld [vmem:[%s1114_s30] sm:$0x1]  ;;  %s1128_s6 = scalar_lea.vmem [#allocation11], %s1109_s22  ;;  %s1132_s25 = scalar_lea.vmem [#allocation12], %s1109_s22  ;;  %v1197_v27 = vld [vmem:[#allocation7 + $0x28] sm:$0xff] (%p1104_p11)  ;;  %v1209_v36 = vadd.f32 (%p1104_p11), %v1201_v55, %v1193_v22 }
 0x2e6   : > { %v1116_v2 = vadd.f32 %v1115_v4, %v1113_v38  ;;  %v1125_v17 = vld [vmem:[%s1124_s24] sm:$0x1]  ;;  %v1205_v61 = vld [vmem:[#allocation8 + $0x28] sm:$0xff] (%p1104_p11) }
 0x2e7   : > { %v1126_v39 = vadd.f32 %v1125_v17, %v1111_v37  ;;  %v1129_v40 = vld [vmem:[%s1128_s6] sm:$0x1] }
 0x2e8   : > { %v1117_v41 = vadd.f32 %v1116_v2, %v1111_v37  ;;  %v1130_v10 = vadd.f32 1.0, %v1129_v40  ;;  %v1133_v21 = vld [vmem:[%s1132_s25] sm:$0x1]  ;;  %v1213_v37 = vadd.f32 (%p1104_p11), %v1205_v61, %v1197_v27 }
 0x2e9   : > { %1127 = vst.msk [vmem:[%s1124_s24] sm:$0x1] %vm1122_vm2, %v1126_v39  ;;  %1106 = sbr.rel (!%p1104_p11) target bundleno = 733 (0x2dd), region = 151  ;;  %v1196_v33 = vld [vmem:[#allocation7 + $0x20] sm:$0xff] (%p1104_p11)  ;;  %v1199_v39 = vld [vmem:[#allocation7 + $0x38] sm:$0xff] (%p1104_p11) }
 0x2ea   : > { %vm1118_vm3 = vcmp.gt.f32.partialorder %v1117_v41, 0.0  ;;  %v1119_v42 = vmul.f32 0.2, %v1117_v41  ;;  %1131 = vst.msk [vmem:[%s1128_s6] sm:$0x1] %vm1122_vm2, %v1130_v10  ;;  %v1204_v34 = vld [vmem:[#allocation8 + $0x20] sm:$0xff] (%p1104_p11) }
 0x2eb   :  { %v1212_v10 = vadd.f32 (%p1104_p11), %v1204_v34, %v1196_v33 }
 0x2ec   : > { %v1120_v19 = vsel %vm1118_vm3, %v1117_v41, %v1119_v42  ;;  %v1207_v42 = vld [vmem:[#allocation8 + $0x38] sm:$0xff] (%p1104_p11) }
 0x2ed   : > { %1123 = vst.msk [vmem:[%s1121_s26] sm:$0x1] %vm1122_vm2, %v1120_v19  ;;  %v1134_v23 = vmax.f32 %v1133_v21, %v1120_v19  ;;  %v1198_v21 = vld [vmem:[#allocation7 + $0x30] sm:$0xff] (%p1104_p11)  ;;  %v1215_v11 = vadd.f32 (%p1104_p11), %v1207_v42, %v1199_v39 }
 0x2ee   :  { %v1206_v19 = vld [vmem:[#allocation8 + $0x30] sm:$0xff] (%p1104_p11) }
 0x2ef   : > { %1135 = vst.msk [vmem:[%s1132_s25] sm:$0x1] %vm1122_vm2, %v1134_v23 }
 0x2f0   :  { %v1154_v58 = vld [vmem:[#allocation10 + $0x10] sm:$0xff]  ;;  %v1152_v3 = vld [vmem:[#allocation10] sm:$0xff]  ;;  %v1155_v31 = vld [vmem:[#allocation10 + $0x18] sm:$0xff] }
 0x2f1   :  { %v1138_v44 = vld [vmem:[#allocation11 + $0x10] sm:$0xff]  ;;  %v1136_v48 = vld [vmem:[#allocation11] sm:$0xff]  ;;  %v2691_v51 = vld [vmem:[#allocation11 + $0x18] sm:$0xff] }
 0x2f2   :  { %v1162_v7 = vmax.f32 %v1138_v44, 1.0  ;;  %v1160_v12 = vmax.f32 %v1136_v48, 1.0  ;;  %v1163_v14 = vmax.f32 %v2691_v51, 1.0  ;;  %v2694_v52 = vld [vmem:[#allocation11 + $0x8] sm:$0xff]  ;;  %v2700_v16 = vld [vmem:[#allocation11 + $0x20] sm:$0xff]  ;;  %v2703_v5 = vld [vmem:[#allocation11 + $0x38] sm:$0xff] }
 0x2f3   :  { %v1161_v53 = vmax.f32 %v2694_v52, 1.0  ;;  %v2697_v54 = vld [vmem:[#allocation11 + $0x28] sm:$0xff]  ;;  %v1164_v62 = vmax.f32 %v2700_v16, 1.0  ;;  %v1167_v18 = vmax.f32 %v2703_v5, 1.0  ;;  %v2706_v20 = vld [vmem:[#allocation11 + $0x30] sm:$0xff]  ;;  %vm1146_vm4 = vcmp.gt.f32.partialorder %v1138_v44, 0.0 }
 0x2f4   :  { %1988 = vrcp.f32 %v1162_v7  ;;  %v1165_v56 = vmax.f32 %v2697_v54, 1.0  ;;  %v1166_v28 = vmax.f32 %v2706_v20, 1.0  ;;  %vm1144_vm5 = vcmp.gt.f32.partialorder %v1136_v48, 0.0  ;;  %v1153_v6 = vld [vmem:[#allocation10 + $0x8] sm:$0xff]  ;;  %v1156_v60 = vld [vmem:[#allocation10 + $0x20] sm:$0xff]  ;;  %v1159_v9 = vld [vmem:[#allocation10 + $0x38] sm:$0xff] }
 0x2f5   :  { %1990 = vrcp.f32 %v1160_v12  ;;  %vm1147_vm6 = vcmp.gt.f32.partialorder %v2691_v51, 0.0  ;;  %vm1145_vm7 = vcmp.gt.f32.partialorder %v2694_v52, 0.0  ;;  %vm1149_vm8 = vcmp.gt.f32.partialorder %v2697_v54, 0.0  ;;  %v1157_v17 = vld [vmem:[#allocation10 + $0x28] sm:$0xff] }
 0x2f6   :  { %1992 = vrcp.f32 %v1163_v14  ;;  %vm1148_vm9 = vcmp.gt.f32.partialorder %v2700_v16, 0.0  ;;  %vm1151_vm10 = vcmp.gt.f32.partialorder %v2703_v5, 0.0  ;;  %v1250_v7 = vld [vmem:[#allocation12 + $0x10] sm:$0xff]  ;;  %v1251_v22 = vld [vmem:[#allocation12 + $0x18] sm:$0xff]  ;;  %vm1150_vm14 = vcmp.gt.f32.partialorder %v2706_v20, 0.0  ;;  %v1253_v33 = vld [vmem:[#allocation12 + $0x28] sm:$0xff] }
 0x2f7   :  { %1994 = vrcp.f32 %v1161_v53  ;;  %v1248_v53 = vld [vmem:[#allocation12] sm:$0xff] }
 0x2f8   :  { %1996 = vrcp.f32 %v1165_v56 }
 0x2f9   :  { %1998 = vrcp.f32 %v1164_v62 }
 0x2fa   :  { %2000 = vrcp.f32 %v1167_v18  ;;  %v2720_v18 = vadd.f32 %v1206_v19, %v1198_v21  ;;  %v1252_v21 = vld [vmem:[#allocation12 + $0x20] sm:$0xff] }
 0x2fb   :  { %2002 = vrcp.f32 %v1166_v28 }
 0x2fe   :  { %v1989_v24 = vpop.eup %1988 }
 0x2ff   :  { %v1991_v29 = vpop.eup %1990  ;;  %v1173_v30 = vmul.f32 %v1989_v24, %v1154_v58 }
 0x300   :  { %v1169_v1 = vmul.f32 %v1991_v29, %v1152_v3  ;;  %v1993_v63 = vpop.eup %1992 }
 0x301   :  { %v1186_v35 = vsel %vm1146_vm4, %v1173_v30, 0.0  ;;  %v1175_v2 = vmul.f32 %v1993_v63, %v1155_v31  ;;  %v1995_v40 = vpop.eup %1994 }
 0x302   :  { %v1218_v38 = vadd.f32 %v1210_v26, %v1186_v35  ;;  %v1184_v4 = vsel %vm1144_vm5, %v1169_v1, 0.0  ;;  %v1997_v23 = vpop.eup %1996  ;;  %v1171_v12 = vmul.f32 %v1995_v40, %v1153_v6 }
 0x303   :  { %v1216_v41 = vadd.f32 %v1208_v59, %v1184_v4  ;;  %v1187_v48 = vsel %vm1147_vm6, %v1175_v2, 0.0  ;;  %v1179_v58 = vmul.f32 %v1997_v23, %v1157_v17  ;;  %v1999_v62 = vpop.eup %1998  ;;  %v1158_v4 = vld [vmem:[#allocation10 + $0x30] sm:$0xff] }
 0x304   :  { %vm1226_vm11 = vcmp.gt.f32.partialorder %v1218_v38, 0.0  ;;  %v1234_v44 = vmul.f32 0.2, %v1218_v38  ;;  %v1219_v56 = vadd.f32 %v1211_v32, %v1187_v48  ;;  %v1185_v3 = vsel %vm1145_vm7, %v1171_v12, 0.0  ;;  %v2001_v24 = vpop.eup %2000  ;;  %v1249_v32 = vld [vmem:[#allocation12 + $0x8] sm:$0xff]  ;;  %v1255_v48 = vld [vmem:[#allocation12 + $0x38] sm:$0xff] }
 0x305   :  { %vm1224_vm12 = vcmp.gt.f32.partialorder %v1216_v41, 0.0  ;;  %v1232_v14 = vmul.f32 0.2, %v1216_v41  ;;  %v1217_v55 = vadd.f32 %v1209_v36, %v1185_v3  ;;  %v1189_v27 = vsel %vm1149_vm8, %v1179_v58, 0.0  ;;  %v2003_v35 = vpop.eup %2002  ;;  %v1254_v3 = vld [vmem:[#allocation12 + $0x30] sm:$0xff] }
 0x306   :  { %v1242_v0 = vsel %vm1226_vm11, %v1218_v38, %v1234_v44  ;;  %vm1227_vm13 = vcmp.gt.f32.partialorder %v1219_v56, 0.0  ;;  %v1235_v51 = vmul.f32 0.2, %v1219_v56  ;;  %v1177_v61 = vmul.f32 %v1999_v62, %v1156_v60 }
 0x307   :  { %v1258_v49 = vmax.f32 %v1250_v7, %v1242_v0  ;;  %v1240_v57 = vsel %vm1224_vm12, %v1216_v41, %v1232_v14  ;;  %v1221_v29 = vadd.f32 %v1213_v37, %v1189_v27  ;;  %v1183_v30 = vmul.f32 %v2001_v24, %v1159_v9 }
 0x308   :  { %v1256_v26 = vmax.f32 %v1248_v53, %v1240_v57  ;;  %v1243_v28 = vsel %vm1227_vm13, %v1219_v56, %v1235_v51  ;;  %vm1225_vm15 = vcmp.gt.f32.partialorder %v1217_v55, 0.0  ;;  %v1233_v1 = vmul.f32 0.2, %v1217_v55 }
 0x309   :  { %v1274_v52 = vsub.f32 %v1242_v0, %v1258_v49  ;;  %1266 = vst.msk [vmem:[#allocation12 + $0x10] sm:$0xff] %vm959_vm1, %v1258_v49  ;;  %v1259_v31 = vmax.f32 %v1251_v22, %v1243_v28  ;;  %vm1229_vm0 = vcmp.gt.f32.partialorder %v1221_v29, 0.0  ;;  %v1237_v63 = vmul.f32 0.2, %v1221_v29 }
 0x30a   :  { %v1272_v59 = vsub.f32 %v1240_v57, %v1256_v26  ;;  %1264 = vst.msk [vmem:[#allocation12] sm:$0xff] %vm959_vm1, %v1256_v26  ;;  %v1188_v54 = vsel %vm1148_vm9, %v1177_v61, 0.0  ;;  %v1241_v37 = vsel %vm1225_vm15, %v1217_v55, %v1233_v1  ;;  %v1191_v39 = vsel %vm1151_vm10, %v1183_v30, 0.0 }
 0x30b   :  { %v1284_v34 = vmul.f32 1.442695, %v1274_v52  ;;  %1267 = vst.msk [vmem:[#allocation12 + $0x18] sm:$0xff] %vm959_vm1, %v1259_v31  ;;  %v1275_v36 = vsub.f32 %v1243_v28, %v1259_v31  ;;  %v1220_v38 = vadd.f32 %v1212_v10, %v1188_v54  ;;  %v1257_v2 = vmax.f32 %v1249_v32, %v1241_v37 }
 0x30c   :  { %v1280_v6 = vmul.f32 1.442695, %v1272_v59  ;;  %v1245_v17 = vsel %vm1229_vm0, %v1221_v29, %v1237_v63  ;;  %v1223_v19 = vadd.f32 %v1215_v11, %v1191_v39  ;;  %v1181_v23 = vmul.f32 %v2003_v35, %v1158_v4 }
 0x30d   :  { %2004 = vpow2.f32 %v1284_v34  ;;  %v1286_v40 = vmul.f32 1.442695, %v1275_v36  ;;  %v1261_v41 = vmax.f32 %v1253_v33, %v1245_v17  ;;  %vm1228_vm3 = vcmp.gt.f32.partialorder %v1220_v38, 0.0  ;;  %1265 = vst.msk [vmem:[#allocation12 + $0x8] sm:$0xff] %vm959_vm1, %v1257_v2 }
 0x30e   :  { %2006 = vpow2.f32 %v1280_v6  ;;  %v1273_v16 = vsub.f32 %v1241_v37, %v1257_v2  ;;  %v1236_v42 = vmul.f32 0.2, %v1220_v38  ;;  %vm1231_vm4 = vcmp.gt.f32.partialorder %v1223_v19, 0.0 }
 0x30f   :  { %2008 = vpow2.f32 %v1286_v40  ;;  %1269 = vst.msk [vmem:[#allocation12 + $0x28] sm:$0xff] %vm959_vm1, %v1261_v41  ;;  %v1277_v10 = vsub.f32 %v1245_v17, %v1261_v41  ;;  %v1239_v5 = vmul.f32 0.2, %v1223_v19  ;;  %v1190_v53 = vsel %vm1150_vm14, %v1181_v23, 0.0 }
 0x310   :  { %v1282_v44 = vmul.f32 1.442695, %v1273_v16  ;;  %v1244_v7 = vsel %vm1228_vm3, %v1220_v38, %v1236_v42  ;;  %v1222_v58 = vadd.f32 %v2720_v18, %v1190_v53 }
 0x311   :  { %v1290_v12 = vmul.f32 1.442695, %v1277_v10  ;;  %v1260_v14 = vmax.f32 %v1252_v21, %v1244_v7  ;;  %v1247_v56 = vsel %vm1231_vm4, %v1223_v19, %v1239_v5 }
 0x312   :  { %2010 = vpow2.f32 %v1282_v44  ;;  %v1263_v62 = vmax.f32 %v1255_v48, %v1247_v56  ;;  %vm1230_vm5 = vcmp.gt.f32.partialorder %v1222_v58, 0.0  ;;  %v1238_v0 = vmul.f32 0.2, %v1222_v58 }
 0x313   :  { %2012 = vpow2.f32 %v1290_v12  ;;  %1268 = vst.msk [vmem:[#allocation12 + $0x20] sm:$0xff] %vm959_vm1, %v1260_v14  ;;  %v1276_v60 = vsub.f32 %v1244_v7, %v1260_v14 }
 0x314   :  { %1271 = vst.msk [vmem:[#allocation12 + $0x38] sm:$0xff] %vm959_vm1, %v1263_v62  ;;  %v1279_v11 = vsub.f32 %v1247_v56, %v1263_v62  ;;  %v1246_v57 = vsel %vm1230_vm5, %v1222_v58, %v1238_v0 }
 0x315   :  { %v1288_v9 = vmul.f32 1.442695, %v1276_v60  ;;  %v1262_v51 = vmax.f32 %v1254_v3, %v1246_v57 }
 0x316   :  { %v1294_v18 = vmul.f32 1.442695, %v1279_v11 }
 0x317   :  { %v2005_v49 = vpop.eup %2004  ;;  %2014 = vpow2.f32 %v1288_v9  ;;  %1270 = vst.msk [vmem:[#allocation12 + $0x30] sm:$0xff] %vm959_vm1, %v1262_v51  ;;  %v1278_v24 = vsub.f32 %v1246_v57, %v1262_v51 }
 0x318   :  { %v2007_v20 = vpop.eup %2006  ;;  %1316 = vperm.xlu1 %1987, %v2005_v49   ;;  %1298 = vst.msk [vmem:[#allocation13 + $0x10] sm:$0xff] %vm959_vm1, %v2005_v49  ;;  %2016 = vpow2.f32 %v1294_v18 }
 0x319   :  { %1306 = vperm.xlu0 %1986, %v2007_v20   ;;  %1296 = vst.msk [vmem:[#allocation13] sm:$0xff] %vm959_vm1, %v2007_v20  ;;  %v2009_v22 = vpop.eup %2008  ;;  %v1292_v26 = vmul.f32 1.442695, %v1278_v24 }
 0x31a   :  { %1299 = vst.msk [vmem:[#allocation13 + $0x18] sm:$0xff] %vm959_vm1, %v2009_v22 }
 0x31b   :  { %2018 = vpow2.f32 %v1292_v26 }
 0x31c   :  { %1321 = vperm.xlu1 %1987, %v2009_v22   ;;  %v2011_v55 = vpop.eup %2010 }
 0x31d   :  { %v2013_v27 = vpop.eup %2012  ;;  %1297 = vst.msk [vmem:[#allocation13 + $0x8] sm:$0xff] %vm959_vm1, %v2011_v55  ;;  %1311 = vperm.xlu0 %1986, %v2011_v55  }
 0x31e   :  { %1301 = vst.msk [vmem:[#allocation13 + $0x28] sm:$0xff] %vm959_vm1, %v2013_v27 }
 0x320   :  { %1331 = vperm.xlu1 %1987, %v2013_v27  }
 0x321   :  { %v2015_v61 = vpop.eup %2014 }
 0x322   :  { %1300 = vst.msk [vmem:[#allocation13 + $0x20] sm:$0xff] %vm959_vm1, %v2015_v61  ;;  %1326 = vperm.xlu0 %1986, %v2015_v61   ;;  %v2017_v52 = vpop.eup %2016 }
 0x323   :  { %1303 = vst.msk [vmem:[#allocation13 + $0x38] sm:$0xff] %vm959_vm1, %v2017_v52 }
 0x324   :  { %1341 = vperm.xlu1 %1987, %v2017_v52  }
 0x325   :  { %v2019_v28 = vpop.eup %2018 }
 0x326   :  { %1302 = vst.msk [vmem:[#allocation13 + $0x30] sm:$0xff] %vm959_vm1, %v2019_v28  ;;  %1336 = vperm.xlu0 %1986, %v2019_v28  }
 0x397   :  { %v1317_v29 = vpop.permute.xlu1 %1316 }
 0x398   :  { %v1346_v30 = vmul.f32 %v1317_v29, %v2546_v46  ;;  %v1307_v59 = vpop.permute.xlu0 %1306 }
 0x399   :  { %v1344_v31 = vmul.f32 %v1307_v59, %v2538_v43 }
 0x39a   :  { %1354 = vst [vmem:[#allocation14 + $0x10] sm:$0xff] %v1346_v30 }
 0x39b   :  { %1352 = vst [vmem:[#allocation14] sm:$0xff] %v1344_v31  ;;  %v1322_v1 = vpop.permute.xlu1 %1321 }
 0x39c   :  { %v1347_v32 = vmul.f32 %v2543_v45, %v1322_v1  ;;  %v1312_v33 = vpop.permute.xlu0 %1311 }
 0x39d   :  { %v1345_v34 = vmul.f32 %v2535_v25, %v1312_v33 }
 0x39e   :  { %1355 = vst [vmem:[#allocation14 + $0x18] sm:$0xff] %v1347_v32 }
 0x39f   :  { %v1332_v63 = vpop.permute.xlu1 %1331  ;;  %1353 = vst [vmem:[#allocation14 + $0x8] sm:$0xff] %v1345_v34 }
 0x3a0   :  { %v1349_v54 = vmul.f32 %v2551_v8, %v1332_v63 }
 0x3a1   :  { %v1327_v35 = vpop.permute.xlu0 %1326 }
 0x3a2   :  { %1357 = vst [vmem:[#allocation14 + $0x28] sm:$0xff] %v1349_v54  ;;  %v1348_v46 = vmul.f32 %v1327_v35, %v2556_v13 }
 0x3a3   :  { %v1342_v6 = vpop.permute.xlu1 %1341 }
 0x3a4   :  { %1356 = vst [vmem:[#allocation14 + $0x20] sm:$0xff] %v1348_v46  ;;  %v1351_v43 = vmul.f32 %v2559_v50, %v1342_v6 }
 0x3a5   :  { %v1337_v36 = vpop.permute.xlu0 %1336 }
 0x3a6   :  { %1359 = vst [vmem:[#allocation14 + $0x38] sm:$0xff] %v1351_v43  ;;  %v1350_v45 = vmul.f32 %v1337_v36, %v2564_v15 }
 0x3a8   :  { %1358 = vst [vmem:[#allocation14 + $0x30] sm:$0xff] %v1350_v45 }
 0x3a9 LB: > { %v2148_v25 = vmov 0   ;;  %s1367_s28 = sld [smem:[#allocation18 + %s2141_s27]]  ;;  %s1368_s29 = scalar_lea.vmem [#allocation9], %s2141_s27  ;;  %s2141_s27 = sphi %s2756_s27, %s1365_s27  }
 0x3aa   : > { %2020 = vset.pattern.permute.xlu0 %v2148_v25  ;;  %v1369_v8 = vld [vmem:[%s1368_s29] sm:$0x1]  ;;  %s1366_s3 = sld [smem:[#allocation15 + %s2141_s27]]  ;;  %s1365_s27 = sadd.s32 1, %s2141_s27  }
 0x3ab   : > { %p1362_p12 = scmp.ge.s32.totalorder %s1365_s27, 128  }
 0x3ac   :  { %2024 = vset.pattern.permute.xlu1 (%p1362_p12), %v2147_v47  ;;  %s2149_s8 = smov (%p1362_p12), [#allocation20]  }
 0x3ad   :  { %s1585_s1 = sshll.u32 (%p1362_p12), %s2149_s8, 4  ;;  %s1586_s1 = int_to_ptr.vmem [resolvable:$true] %s1585_s1 }
 0x3ae   :  { %s2067_s10 = scalar_lea.vmem (%p1362_p12), %s1586_s1, 2048  ;;  %p2072_p0 = scmp.lt.s32.totalorder (%p1362_p12), %s1586_s1, %s1586_s1 }
 0x3af   : > { %s1370_s5 = scalar_lea.vmem [#allocation12], %s1367_s28  ;;  %s1375_s0 = scalar_lea.vmem [#allocation13], %s1367_s28 }
 0x3b0   : > { %v1371_v13 = vld [vmem:[%s1370_s5] sm:$0x1]  ;;  %s1382_s19 = scalar_lea.vmem [#allocation4], %s1366_s3  ;;  %s1380_s7 = scalar_lea.vmem [#allocation14], %s1367_s28 }
 0x3b1   : > { %v1372_v37 = vsub.f32 %v1369_v8, %v1371_v13  ;;  %v1376_v38 = vld [vmem:[%s1375_s0] sm:$0x1]  ;;  %p2068_p13 = scmp.ne.s32.totalorder (%p1362_p12), %s1586_s1, %s2067_s10  ;;  %p2073_p1 = scmp.lt.s32.totalorder (%p1362_p12), %s2067_s10, %s2067_s10 }
 0x3b2   : > { %v1383_v2 = vld [vmem:[%s1382_s19] sm:$0x1] }
 0x3b3   : > { %v1373_v50 = vmul.f32 1.442695, %v1372_v37  ;;  %v1381_v17 = vld [vmem:[%s1380_s7] sm:$0x1]  ;;  %p2074_p2 = por (%p1362_p12), %p2073_p1, %p2072_p0 }
 0x3b5   : > { %2021 = vpow2.f32 %v1373_v50  ;;  %p2075_p3 = pnand (%p1362_p12), %p2074_p2, %p2068_p13 }
 0x3bf   : > { %v2022_v15 = vpop.eup %2021 }
 0x3c0   : > { %1386 = vperm.xlu0 %2020, %v2022_v15   ;;  %v1377_v4 = vadd.f32 %v2022_v15, %v1376_v38 }
 0x3c2   : > { %1379 = vst.msk [vmem:[%s1375_s0] sm:$0x1] %vm1122_vm2, %v1377_v4 }
 0x3c4   :  { %2023 = vset.pattern.permute.xlu0 (%p1362_p12), %v2147_v47 }
 0x3c9   :  { %v1402_v16 = vld [vmem:[#allocation13 + $0x10] sm:$0xff] (%p1362_p12)  ;;  %v1400_v42 = vld [vmem:[#allocation13] sm:$0xff] (%p1362_p12)  ;;  %v1403_v21 = vld [vmem:[#allocation13 + $0x18] sm:$0xff] (%p1362_p12) }
 0x3ca   :  { %1420 = vperm.xlu1 (%p1362_p12), %2024, %v1402_v16   ;;  %1410 = vperm.xlu0 (%p1362_p12), %2023, %v1400_v42   ;;  %v1401_v19 = vld [vmem:[#allocation13 + $0x8] sm:$0xff] (%p1362_p12)  ;;  %v1404_v10 = vld [vmem:[#allocation13 + $0x20] sm:$0xff] (%p1362_p12)  ;;  %v1407_v44 = vld [vmem:[#allocation13 + $0x38] sm:$0xff] (%p1362_p12) }
 0x3cb   :  { %v1405_v23 = vld [vmem:[#allocation13 + $0x28] sm:$0xff] (%p1362_p12)  ;;  %v1406_v7 = vld [vmem:[#allocation13 + $0x30] sm:$0xff] (%p1362_p12) }
 0x3ce   :  { %1425 = vperm.xlu1 (%p1362_p12), %2024, %v1403_v21   ;;  %1415 = vperm.xlu0 (%p1362_p12), %2023, %v1401_v19  }
 0x3d2   :  { %1435 = vperm.xlu1 (%p1362_p12), %2024, %v1405_v23   ;;  %1430 = vperm.xlu0 (%p1362_p12), %2023, %v1404_v10  }
 0x3d6   :  { %1445 = vperm.xlu1 (%p1362_p12), %2024, %v1407_v44   ;;  %1440 = vperm.xlu0 (%p1362_p12), %2023, %v1406_v7  }
 0x43e   :  { %1364 = sbr.rel (!%p1362_p12) target bundleno = 937 (0x3a9), region = 162 }
 0x43f   : > { %v1387_v39 = vpop.permute.xlu0 %1386 }
 0x440   : > { %v1389_v40 = vmul.f32 %v1387_v39, %v1383_v2 }
 0x442   : > { %v1390_v41 = vadd.f32 %v1389_v40, %v1381_v17 }
 0x444   : > { %1391 = vst [vmem:[%s1380_s7] sm:$0x1] %v1390_v41 }
 0x445   :  { %2078 = shalt.err (!%p2075_p3)
}
 0x446   :  { %s2079_s12 = scalar_lea.hbm %s2820_s17, 2048 }
 0x447   :  { %p2080_p4 = scmp.ne.s32.totalorder %s2820_s17, %s2079_s12  ;;  %p2083_p5 = scmp.lt.u32.totalorder %s2079_s12, %s2820_s17 }
 0x449   :  { %p2085_p6 = pnand %p2083_p5, %p2080_p4 }
 0x44b   :  { %2088 = shalt.err (!%p2085_p6)
}
 0x44c   :  { %s2150_s22 = smov 128   ;;  %s2151_s2 = smov 8   ;;  %v1421_v47 = vpop.permute.xlu1 %1420  ;;  %v1411_v5 = vpop.permute.xlu0 %1410  ;;  %v1392_v58 = vld [vmem:[#allocation14] sm:$0xff]  ;;  %v1394_v3 = vld [vmem:[#allocation14 + $0x10] sm:$0xff]  ;;  %v1393_v9 = vld [vmem:[#allocation14 + $0x8] sm:$0xff] }
 0x44d   :  { %1591 = dma.vmem_to_hbm [thread:$0]  %s1586_s1, 2048, %s2820_s17, [#allocation16], %s2150_s22, %s2150_s22, %s2151_s2   ;;  %2025 = vrcp.f32 %v1411_v5  ;;  %v1395_v18 = vld [vmem:[#allocation14 + $0x18] sm:$0xff]  ;;  %v1396_v24 = vld [vmem:[#allocation14 + $0x20] sm:$0xff]  ;;  %v1397_v28 = vld [vmem:[#allocation14 + $0x28] sm:$0xff] }
 0x44e   :  { %2027 = vrcp.f32 %v1421_v47  ;;  %v1689_v20 = vld [vmem:[%s2817_s14] ss:$0 sm:$0xff]  ;;  %v1398_v31 = vld [vmem:[#allocation14 + $0x30] sm:$0xff]  ;;  %v1399_v54 = vld [vmem:[#allocation14 + $0x38] sm:$0xff] }
 0x450   :  { %v1426_v48 = vpop.permute.xlu1 %1425  ;;  %v1416_v12 = vpop.permute.xlu0 %1415 }
 0x451   :  { %2029 = vrcp.f32 %v1426_v48 }
 0x452   :  { %2031 = vrcp.f32 %v1416_v12 }
 0x454   :  { %v1436_v14 = vpop.permute.xlu1 %1435  ;;  %v1431_v53 = vpop.permute.xlu0 %1430 }
 0x455   :  { %2033 = vrcp.f32 %v1436_v14 }
 0x456   :  { %2035 = vrcp.f32 %v1431_v53 }
 0x457   :  { %v2026_v56 = vpop.eup %2025 }
 0x458   :  { %v1446_v60 = vpop.permute.xlu1 %1445  ;;  %v1441_v62 = vpop.permute.xlu0 %1440  ;;  %v1449_v49 = vmul.f32 %v2026_v56, %v1392_v58 }
 0x459   :  { %2037 = vrcp.f32 %v1446_v60  ;;  %v2028_v0 = vpop.eup %2027 }
 0x45a   :  { %2039 = vrcp.f32 %v1441_v62  ;;  %v1453_v51 = vmul.f32 %v2028_v0, %v1394_v3  ;;  %v1471_v55 = vadd.f32 %v1689_v20, %v1449_v49 }
 0x45b   :  { %v2030_v11 = vpop.eup %2029 }
 0x45c   :  { %v2032_v57 = vpop.eup %2031  ;;  %v1455_v27 = vmul.f32 %v2030_v11, %v1395_v18  ;;  %v1473_v29 = vadd.f32 %v1689_v20, %v1453_v51 }
 0x45d   :  { %v1451_v22 = vmul.f32 %v2032_v57, %v1393_v9 }
 0x45e   :  { %v1474_v32 = vadd.f32 %v1689_v20, %v1455_v27  ;;  %v1690_v27 = vld [vmem:[%s2818_s15] ss:$0 sm:$0xff]  ;;  %s2152_s15 = smov [#allocation21]  }
 0x45f   :  { %v2034_v26 = vpop.eup %2033  ;;  %v1472_v61 = vadd.f32 %v1689_v20, %v1451_v22  ;;  %s1597_s27 = sshll.u32 %s2152_s15, 4  ;;  %s1598_s27 = int_to_ptr.vmem [resolvable:$true] %s1597_s27 }
 0x460   :  { %v2036_v52 = vpop.eup %2035  ;;  %v1459_v34 = vmul.f32 %v2034_v26, %v1397_v28  ;;  %p2094_p8 = scmp.lt.s32.totalorder %s1598_s27, %s1598_s27 }
 0x461   :  { %v1479_v30 = vadd.f32 %v1472_v61, %v1471_v55  ;;  %v1457_v59 = vmul.f32 %v2036_v52, %v1396_v24 }
 0x462   :  { %v1476_v43 = vadd.f32 %v1689_v20, %v1459_v34 }
 0x463   :  { %v2038_v1 = vpop.eup %2037  ;;  %v1480_v33 = vadd.f32 %v1479_v30, %v1473_v29  ;;  %v1475_v35 = vadd.f32 %v1689_v20, %v1457_v59  ;;  %v1691_v30 = vld [vmem:[%s2819_s16] ss:$0 sm:$0xff]  ;;  %s2089_s16 = scalar_lea.vmem %s1598_s27, 1024 }
 0x464   :  { %v2040_v63 = vpop.eup %2039  ;;  %v1463_v45 = vmul.f32 %v2038_v1, %v1399_v54  ;;  %p2090_p7 = scmp.ne.s32.totalorder %s1598_s27, %s2089_s16  ;;  %p2095_p9 = scmp.lt.s32.totalorder %s2089_s16, %s2089_s16 }
 0x465   :  { %v1481_v46 = vadd.f32 %v1480_v33, %v1474_v32  ;;  %v1461_v6 = vmul.f32 %v2040_v63, %v1398_v31 }
 0x466   :  { %v1478_v13 = vadd.f32 %v1689_v20, %v1463_v45  ;;  %p2096_p10 = por %p2095_p9, %p2094_p8 }
 0x467   :  { %v1482_v36 = vadd.f32 %v1481_v46, %v1475_v35  ;;  %v1477_v25 = vadd.f32 %v1689_v20, %v1461_v6 }
 0x468   :  { %p2097_p11 = pnand %p2096_p10, %p2090_p7 }
 0x469   :  { %v1483_v8 = vadd.f32 %v1482_v36, %v1476_v43 }
 0x46b   :  { %v1484_v37 = vadd.f32 %v1483_v8, %v1477_v25 }
 0x46d   :  { %v1485_v50 = vadd.f32 %v1484_v37, %v1478_v13 }
 0x46f   :  { %v1486_v38 = vrot.slane %v1485_v50, 4 }
 0x471   :  { %v1487_v15 = vadd.f32 %v1486_v38, %v1485_v50 }
 0x473   :  { %v1488_v4 = vrot.slane %v1487_v15, 2 }
 0x475   :  { %v1489_v2 = vadd.f32 %v1488_v4, %v1487_v15 }
 0x477   :  { %v1490_v17 = vrot.slane %v1489_v2, 1 }
 0x479   :  { %v1491_v39 = vadd.f32 %v1490_v17, %v1489_v2 }
 0x47b   :  { %v1493_v40 = vmul.f32 0.015625, %v1491_v39 }
 0x47d   :  { %v1494_v41 = vsub.f32 %v1471_v55, %v1493_v40  ;;  %v1495_v16 = vsub.f32 %v1472_v61, %v1493_v40  ;;  %v1496_v42 = vsub.f32 %v1473_v29, %v1493_v40  ;;  %v1497_v21 = vsub.f32 %v1474_v32, %v1493_v40 }
 0x47e   :  { %v1498_v10 = vsub.f32 %v1475_v35, %v1493_v40  ;;  %v1499_v47 = vsub.f32 %v1476_v43, %v1493_v40  ;;  %v1500_v12 = vsub.f32 %v1477_v25, %v1493_v40  ;;  %v1501_v56 = vsub.f32 %v1478_v13, %v1493_v40 }
 0x47f   :  { %v1502_v19 = vmul.f32 %v1494_v41, %v1494_v41  ;;  %v1503_v23 = vmul.f32 %v1495_v16, %v1495_v16  ;;  %v1504_v44 = vmul.f32 %v1496_v42, %v1496_v42  ;;  %v1505_v5 = vmul.f32 %v1497_v21, %v1497_v21 }
 0x480   :  { %v1506_v14 = vmul.f32 %v1498_v10, %v1498_v10  ;;  %v1507_v58 = vmul.f32 %v1499_v47, %v1499_v47  ;;  %v1508_v62 = vmul.f32 %v1500_v12, %v1500_v12  ;;  %v1509_v3 = vmul.f32 %v1501_v56, %v1501_v56 }
 0x481   :  { %v1510_v7 = vadd.f32 %v1503_v23, %v1502_v19 }
 0x483   :  { %v1511_v48 = vadd.f32 %v1510_v7, %v1504_v44 }
 0x485   :  { %v1512_v53 = vadd.f32 %v1511_v48, %v1505_v5 }
 0x487   :  { %v1513_v60 = vadd.f32 %v1512_v53, %v1506_v14 }
 0x489   :  { %v1514_v0 = vadd.f32 %v1513_v60, %v1507_v58 }
 0x48b   :  { %v1515_v9 = vadd.f32 %v1514_v0, %v1508_v62 }
 0x48d   :  { %v1516_v11 = vadd.f32 %v1515_v9, %v1509_v3 }
 0x48f   :  { %v1517_v49 = vrot.slane %v1516_v11, 4 }
 0x491   :  { %v1518_v57 = vadd.f32 %v1517_v49, %v1516_v11 }
 0x493   :  { %v1519_v20 = vrot.slane %v1518_v57, 2 }
 0x495   :  { %v1520_v18 = vadd.f32 %v1519_v20, %v1518_v57 }
 0x497   :  { %v1521_v51 = vrot.slane %v1520_v18, 1 }
 0x499   :  { %v1522_v22 = vadd.f32 %v1521_v51, %v1520_v18 }
 0x49b   :  { %v1523_v24 = vmul.f32 0.015625, %v1522_v22 }
 0x49d   :  { %v1524_v26 = vadd.f32 1e-05, %v1523_v24 }
 0x49f   :  { %2041 = vrsqrt.f32 %v1524_v26 }
 0x4a9   :  { %v2042_v55 = vpop.eup %2041 }
 0x4aa   :  { %v1528_v61 = vmul.f32 %v2042_v55, %v1496_v42  ;;  %v1529_v52 = vmul.f32 %v2042_v55, %v1497_v21  ;;  %v1530_v28 = vmul.f32 %v2042_v55, %v1498_v10  ;;  %v1531_v29 = vmul.f32 %v2042_v55, %v1499_v47 }
 0x4ab   :  { %v1532_v59 = vmul.f32 %v2042_v55, %v1500_v12  ;;  %v1533_v31 = vmul.f32 %v2042_v55, %v1501_v56  ;;  %v1526_v1 = vmul.f32 %v2042_v55, %v1494_v41  ;;  %v1527_v32 = vmul.f32 %v2042_v55, %v1495_v16 }
 0x4ac   :  { %v1545_v33 = vmul.f32 %v1690_v27, %v1530_v28  ;;  %v1546_v34 = vmul.f32 %v1690_v27, %v1531_v29  ;;  %v1543_v63 = vmul.f32 %v1690_v27, %v1528_v61  ;;  %v1544_v54 = vmul.f32 %v1690_v27, %v1529_v52 }
 0x4ad   :  { %v1547_v35 = vmul.f32 %v1690_v27, %v1532_v59  ;;  %v1548_v46 = vmul.f32 %v1690_v27, %v1533_v31  ;;  %v1541_v6 = vmul.f32 %v1690_v27, %v1526_v1  ;;  %v1542_v43 = vmul.f32 %v1690_v27, %v1527_v32 }
 0x4ae   :  { %v1558_v36 = vadd.f32 %v1691_v30, %v1543_v63  ;;  %v1559_v45 = vadd.f32 %v1691_v30, %v1544_v54  ;;  %v1560_v25 = vadd.f32 %v1691_v30, %v1545_v33  ;;  %v1561_v8 = vadd.f32 %v1691_v30, %v1546_v34 }
 0x4af   :  { %v1562_v13 = vadd.f32 %v1691_v30, %v1547_v35  ;;  %v1556_v37 = vadd.f32 %v1691_v30, %v1541_v6  ;;  %v1557_v50 = vadd.f32 %v1691_v30, %v1542_v43  ;;  %v1563_v38 = vadd.f32 %v1691_v30, %v1548_v46 }
 0x4b0   :  { %v1566_v15 = vmax.f32 %v1558_v36, 0.0  ;;  %v1567_v4 = vmax.f32 %v1559_v45, 0.0  ;;  %v1568_v2 = vmax.f32 %v1560_v25, 0.0  ;;  %v1569_v17 = vmax.f32 %v1561_v8, 0.0 }
 0x4b1   :  { %v1570_v39 = vmax.f32 %v1562_v13, 0.0  ;;  %v1564_v40 = vmax.f32 %v1556_v37, 0.0  ;;  %v1565_v41 = vmax.f32 %v1557_v50, 0.0  ;;  %v1571_v16 = vmax.f32 %v1563_v38, 0.0 }
 0x4b2   :  { %1574 = vst [vmem:[#allocation21 + $0x10] sm:$0xff] %v1566_v15  ;;  %1575 = vst [vmem:[#allocation21 + $0x18] sm:$0xff] %v1567_v4 }
 0x4b3   :  { %1576 = vst [vmem:[#allocation21 + $0x20] sm:$0xff] %v1568_v2  ;;  %1577 = vst [vmem:[#allocation21 + $0x28] sm:$0xff] %v1569_v17 }
 0x4b4   :  { %1578 = vst [vmem:[#allocation21 + $0x30] sm:$0xff] %v1570_v39  ;;  %1572 = vst [vmem:[#allocation21] sm:$0xff] %v1564_v40 }
 0x4b5   :  { %1573 = vst [vmem:[#allocation21 + $0x8] sm:$0xff] %v1565_v41  ;;  %1579 = vst [vmem:[#allocation21 + $0x38] sm:$0xff] %v1571_v16 }
 0x4b6   :  { %2100 = shalt.err (!%p2097_p11)
}
 0x4b7   :  { %s2101_s5 = scalar_lea.hbm %s2821_s18, 1024 }
 0x4b8   :  { %p2102_p12 = scmp.ne.s32.totalorder %s2821_s18, %s2101_s5  ;;  %p2105_p13 = scmp.lt.u32.totalorder %s2101_s5, %s2821_s18 }
 0x4ba   :  { %p2107_p0 = pnand %p2105_p13, %p2102_p12 }
 0x4bc   :  { %2110 = shalt.err (!%p2107_p0)
}
 0x4bd   :  { %1603 = dma.vmem_to_hbm [thread:$0]  %s1598_s27, 1024, %s2821_s18, [#allocation22], %s2150_s22, %s2150_s22, %s2151_s2  }
 0x4be   :  { %2127 = dma.done.wait [#allocation16], 2048  }
 0x4bf   :  { %2128 = vsyncadd [#allocation16], 4294965248 }
 0x4c0   :  { %2129 = dma.done.wait [#allocation22], 1024  }
 0x4c1   :  { %2130 = vsyncadd [#allocation22], 4294966272 }
 0x4c2   :  { %1610 = vsyncpa [#allocation16], 1 }
 0x4c3   :  { %1611 = vsyncpa [#allocation22], 1 }
 0x4c4   :  { %1612 = vsyncpa [#allocation17], 1 }
 0x4c5   :  { %1613 = vsyncpa [#allocation19], 1 }

</bundles_post_ra>
